<compile_context>
chip_gen: v7x
topology: tpu7x:2x2x1
jax: 0.10.0
libtpu: 0.0.40
codegen_flags: <defaults>
</compile_context>

<pallas_src>
import functools

import jax
import jax.numpy as jnp
from jax.experimental import pallas as pl
from jax.experimental.pallas import tpu as pltpu

HIDDEN = 512  # fc1 output / fc2 input width (fixed by the PyTorch module)


def _cdiv(a, b):
    return -(-a // b)


def _round_up(x, m):
    return _cdiv(x, m) * m


def _mlp_kernel(x_ref, w1_ref, b1_ref, w2_ref, b2_ref, o_ref, *, chunk):
    """Fused fc1 -> GELU(tanh) -> fc2 on one row tile.

    The row tile is processed in `chunk`-row sub-tiles (statically unrolled)
    so the MXU matmuls of sub-tile k+1 can overlap the EUP/VPU GELU of
    sub-tile k (matters on compute-bound v5e / v7x; neutral on HBM-bound v6e).
    """
    tm = x_ref.shape[0]
    for c in range(tm // chunk):          # static trip count, fully visible to LLO
        r = c * chunk
        xb = x_ref[pl.ds(r, chunk), :].astype(jnp.bfloat16)   # cast in-kernel
        h = jnp.dot(xb, w1_ref[...], preferred_element_type=jnp.float32)
        h = h + b1_ref[...]                                    # f32 bias add
        # tanh-approx GELU in bf16: EUP tanh + halved VPU work on v6e/v7x
        # (bf16 is simply widened internally on v5e). ~1e-3-level drift vs
        # PyTorch's exact-erf f32 GELU; tolerances below account for it.
        h = jax.nn.gelu(h.astype(jnp.bfloat16), approximate=True)
        # TODO(synk): Dropout(p=0.1) is identity in eval/inference; training-
        # mode dropout would mask with pltpu.prng_seed / pltpu.prng_random_bits.
        y = jnp.dot(h, w2_ref[...], preferred_element_type=jnp.float32)
        o_ref[pl.ds(r, chunk), :] = (y + b2_ref[...]).astype(o_ref.dtype)


def _pick_tm(M, tm_req):
    """Row tile: large, 128-aligned, and (when M permits) >= 4 grid steps so
    each v7x TensorCore gets >= 2 steps of the 'parallel' axis."""
    if M <= 128:
        return _round_up(max(M, 8), 8)
    tm = min(_round_up(tm_req, 128), _round_up(M, 128))
    while tm > 128 and _cdiv(M, tm) < 4:
        tm -= 128
    return tm


def _vmem_cap_bytes():
    """Per-generation VMEM budget: physical capacity minus Mosaic headroom."""
    try:
        phys = int(getattr(pltpu.get_tpu_info(), "vmem_capacity_bytes", 64 << 20))
    except Exception:
        phys = 64 << 20                    # conservative (v7x-sized) fallback
    return max(32 << 20, phys - (16 << 20))   # ~48 MiB v7x, ~112 MiB v5e/v6e


def _vmem_estimate(tm, dim, out_itemsize, chunk):
    return (2 * tm * dim * 4                    # f32 x tile, double-buffered
            + 2 * tm * dim * out_itemsize       # out tile, double-buffered
            + 2 * 2 * dim * HIDDEN * 2          # w1 + w2 (bf16), double-buffered
            + 2 * (HIDDEN + dim) * 4            # biases (f32)
            + chunk * (HIDDEN * 6 + dim * 4))   # live per-chunk intermediates


@functools.partial(jax.jit, static_argnames=("tm",))
def mlp_forward(x, w1, b1, w2, b2, *, tm=512):
    """x: (B, N, dim) -> (B, N, dim).  w1:(dim,512) b1:(1,512) w2:(512,dim) b2:(1,dim).

    Activations are read in their native dtype (cast to bf16 inside the
    kernel); no padding / slicing passes around the kernel.  Weights should be
    pre-cast to bf16 once at init (the astype here is then a no-op).
    """
    B, N, dim = x.shape
    M = B * N
    out_dtype = x.dtype
    out_itemsize = jnp.dtype(out_dtype).itemsize

    w1 = w1.astype(jnp.bfloat16)
    w2 = w2.astype(jnp.bfloat16)
    b1 = b1.astype(jnp.float32).reshape(1, HIDDEN)
    b2 = b2.astype(jnp.float32).reshape(1, dim)

    cap = _vmem_cap_bytes()
    tm_eff = _pick_tm(M, tm)
    chunk = min(128, tm_eff)
    # Shrink the row tile if the (generation-dependent) VMEM budget is tight.
    while tm_eff > 128 and int(1.5 * _vmem_estimate(tm_eff, dim, out_itemsize, chunk)) > cap:
        tm_eff -= 128
    chunk = min(128, tm_eff)
    assert tm_eff % chunk == 0
    grid_m = _cdiv(M, tm_eff)

    vmem_limit = int(min(cap, max(
        32 << 20, int(1.5 * _vmem_estimate(tm_eff, dim, out_itemsize, chunk)))))

    cost = pl.CostEstimate(
        flops=4 * grid_m * tm_eff * dim * HIDDEN,        # two matmuls
        transcendentals=grid_m * tm_eff * HIDDEN,        # tanh in GELU
        bytes_accessed=(M * dim * 4 + M * dim * out_itemsize
                        + 2 * dim * HIDDEN * 2 + (HIDDEN + dim) * 4),
    )

    x2d = x.reshape(M, dim)   # metadata-only reshape of a contiguous array

    out2d = pl.pallas_call(
        functools.partial(_mlp_kernel, chunk=chunk),
        out_shape=jax.ShapeDtypeStruct((M, dim), out_dtype),
        grid_spec=pltpu.PrefetchScalarGridSpec(
            num_scalar_prefetch=0,
            grid=(grid_m,),
            in_specs=[
                pl.BlockSpec((tm_eff, dim), lambda i: (i, 0)),   # x row tile
                pl.BlockSpec((dim, HIDDEN), lambda i: (0, 0)),   # w1 (resident)
                pl.BlockSpec((1, HIDDEN), lambda i: (0, 0)),     # b1
                pl.BlockSpec((HIDDEN, dim), lambda i: (0, 0)),   # w2 (resident)
                pl.BlockSpec((1, dim), lambda i: (0, 0)),        # b2
            ],
            out_specs=pl.BlockSpec((tm_eff, dim), lambda i: (i, 0)),
        ),
        compiler_params=pltpu.CompilerParams(
            dimension_semantics=("parallel",),
            vmem_limit_bytes=vmem_limit),
        cost_estimate=cost,
    )(x2d, w1, b1, w2, b2)

    return out2d.reshape(B, N, dim)


def init_params(key, dim):
    """Deterministic init matching the PyTorch module's _init_weights (f32)."""
    k1, k2, k3, k4 = jax.random.split(key, 4)

    def xavier_uniform(k, fan_in, fan_out):
        limit = (6.0 / (fan_in + fan_out)) ** 0.5
        # stored as (in, out) so the kernel computes x @ w (== x @ W.T in torch)
        return jax.random.uniform(k, (fan_in, fan_out), jnp.float32,
                                  minval=-limit, maxval=limit)

    w1 = xavier_uniform(k1, dim, HIDDEN)
    b1 = (1e-6 * jax.random.normal(k2, (1, HIDDEN))).astype(jnp.float32)
    w2 = xavier_uniform(k3, HIDDEN, dim)
    b2 = (1e-6 * jax.random.normal(k4, (1, dim))).astype(jnp.float32)
    return w1, b1, w2, b2


if __name__ == "__main__":
    key = jax.random.PRNGKey(0)
    kx, kp = jax.random.split(key)

    # ViT-like ragged sequence (exercises the partial last row block) with a
    # small feature dim (exercises the lane-masked output store path).
    B, N, dim = 2, 197, 64
    x = jax.random.normal(kx, (B, N, dim), jnp.float32)
    w1, b1, w2, b2 = init_params(kp, dim)

    # One-time (hoisted out of the forward path) bf16 cast of the MXU weights.
    w1_bf = w1.astype(jnp.bfloat16)
    w2_bf = w2.astype(jnp.bfloat16)

    out = mlp_forward(x, w1_bf, b1, w2_bf, b2)
    jax.block_until_ready(out)
    assert out.shape == (B, N, dim)
    assert out.dtype == x.dtype

    # Reference mirroring the kernel numerics (bf16 MXU operands, f32 accum,
    # bf16 tanh-GELU): should match tightly.
    xb = x.reshape(B * N, dim).astype(jnp.bfloat16)
    h_ref = jnp.dot(xb, w1_bf, preferred_element_type=jnp.float32) + b1
    h_ref = jax.nn.gelu(h_ref.astype(jnp.bfloat16), approximate=True)
    ref_match = (jnp.dot(h_ref, w2_bf, preferred_element_type=jnp.float32)
                 + b2).reshape(B, N, dim)
    assert jnp.allclose(out, ref_match, atol=2e-2, rtol=2e-2)

    # Exact f32 / erf-GELU reference (literal PyTorch semantics): small drift
    # from bf16 matmuls + bf16 tanh GELU, so tolerances are loose.
    ref_exact = jax.nn.gelu(x @ w1 + b1[0], approximate=False) @ w2 + b2[0]
    assert jnp.allclose(out, ref_exact, atol=1e-1, rtol=1e-1)

    print("KERNEL_OK")
</pallas_src>

<mosaic_0001>
module attributes {stable_mosaic.version = 11 : i64} {
  func.func @_mlp_kernel(%arg0: i32, %arg1: memref<128x64xf32, #tpu.memory_space<vmem>>, %arg2: memref<64x512xbf16, #tpu.memory_space<vmem>>, %arg3: memref<1x512xf32, #tpu.memory_space<vmem>>, %arg4: memref<512x64xbf16, #tpu.memory_space<vmem>>, %arg5: memref<1x64xf32, #tpu.memory_space<vmem>>, %arg6: memref<128x64xf32, #tpu.memory_space<vmem>>) attributes {dimension_semantics = [#tpu.dimension_semantics<parallel>], iteration_bounds = array<i64: 4>, scalar_prefetch = 0 : i64, scratch_operands = 0 : i64, tpu.core_type = #tpu.core_type<tc>, window_params = [{transform_indices = @transform_0, window_bounds = array<i64: 128, 64>}, {pipeline_mode = #tpu.pipeline_mode<synchronous>, transform_indices = @transform_1, window_bounds = array<i64: 64, 512>}, {pipeline_mode = #tpu.pipeline_mode<synchronous>, transform_indices = @transform_2, window_bounds = array<i64: 1, 512>}, {pipeline_mode = #tpu.pipeline_mode<synchronous>, transform_indices = @transform_3, window_bounds = array<i64: 512, 64>}, {pipeline_mode = #tpu.pipeline_mode<synchronous>, transform_indices = @transform_4, window_bounds = array<i64: 1, 64>}, {transform_indices = @transform_5, window_bounds = array<i64: 128, 64>}]} {
    %c0 = arith.constant 0 : index
    %c0_0 = arith.constant 0 : index
    %0 = vector.load %arg1[%c0, %c0_0] : memref<128x64xf32, #tpu.memory_space<vmem>>, vector<128x64xf32>
    %1 = arith.truncf %0 : vector<128x64xf32> to vector<128x64xbf16>
    %c0_1 = arith.constant 0 : index
    %c0_2 = arith.constant 0 : index
    %2 = vector.load %arg2[%c0_1, %c0_2] : memref<64x512xbf16, #tpu.memory_space<vmem>>, vector<64x512xbf16>
    %cst = arith.constant dense<0.000000e+00> : vector<128x512xf32>
    %3 = tpu.matmul %1, %2, %cst {dimension_numbers = #tpu.dot_dimension_numbers<[1], [0], [0], [1], [0, 0, 1, 1], [], []>} : vector<128x64xbf16>, vector<64x512xbf16>, vector<128x512xf32> -> vector<128x512xf32>
    %c0_3 = arith.constant 0 : index
    %c0_4 = arith.constant 0 : index
    %4 = vector.load %arg3[%c0_3, %c0_4] : memref<1x512xf32, #tpu.memory_space<vmem>>, vector<1x512xf32>
    %5 = vector.broadcast %4 : vector<1x512xf32> to vector<128x512xf32>
    %6 = arith.addf %3, %5 : vector<128x512xf32>
    %7 = arith.truncf %6 : vector<128x512xf32> to vector<128x512xbf16>
    %8 = arith.mulf %7, %7 : vector<128x512xbf16>
    %9 = arith.mulf %7, %8 : vector<128x512xbf16>
    %cst_5 = arith.constant 4.467770e-02 : bf16
    %10 = vector.broadcast %cst_5 : bf16 to vector<128x512xbf16>
    %11 = arith.mulf %10, %9 : vector<128x512xbf16>
    %12 = arith.addf %7, %11 : vector<128x512xbf16>
    %cst_6 = arith.constant 7.968750e-01 : bf16
    %13 = vector.broadcast %cst_6 : bf16 to vector<128x512xbf16>
    %14 = arith.mulf %13, %12 : vector<128x512xbf16>
    %15 = math.tanh %14 : vector<128x512xbf16>
    %cst_7 = arith.constant 1.000000e+00 : bf16
    %16 = vector.broadcast %cst_7 : bf16 to vector<128x512xbf16>
    %17 = arith.addf %16, %15 : vector<128x512xbf16>
    %cst_8 = arith.constant 5.000000e-01 : bf16
    %18 = vector.broadcast %cst_8 : bf16 to vector<128x512xbf16>
    %19 = arith.mulf %18, %17 : vector<128x512xbf16>
    %20 = arith.mulf %7, %19 : vector<128x512xbf16>
    %c0_9 = arith.constant 0 : index
    %c0_10 = arith.constant 0 : index
    %21 = vector.load %arg4[%c0_9, %c0_10] : memref<512x64xbf16, #tpu.memory_space<vmem>>, vector<512x64xbf16>
    %cst_11 = arith.constant dense<0.000000e+00> : vector<128x64xf32>
    %22 = tpu.matmul %20, %21, %cst_11 {dimension_numbers = #tpu.dot_dimension_numbers<[1], [0], [0], [1], [0, 0, 1, 1], [], []>} : vector<128x512xbf16>, vector<512x64xbf16>, vector<128x64xf32> -> vector<128x64xf32>
    %c0_12 = arith.constant 0 : index
    %c0_13 = arith.constant 0 : index
    %23 = vector.load %arg5[%c0_12, %c0_13] : memref<1x64xf32, #tpu.memory_space<vmem>>, vector<1x64xf32>
    %24 = vector.broadcast %23 : vector<1x64xf32> to vector<128x64xf32>
    %25 = arith.addf %22, %24 : vector<128x64xf32>
    %c0_14 = arith.constant 0 : index
    %c0_15 = arith.constant 0 : index
    %26 = vector.load %arg6[%c0_14, %c0_15] : memref<128x64xf32, #tpu.memory_space<vmem>>, vector<128x64xf32>
    tpu.vector_store %arg6[%c0_14, %c0_15], %25 {strides = array<i32>} : memref<128x64xf32, #tpu.memory_space<vmem>>, vector<128x64xf32>,
    return
  }
  func.func @transform_0(%arg0: i32) -> (i32, i32) {
    %c0_i32 = arith.constant 0 : i32
    %c0_i32_0 = arith.constant 0 : i32
    return %arg0, %c0_i32 : i32, i32
  }
  func.func @transform_1(%arg0: i32) -> (i32, i32) {
    %c0_i32 = arith.constant 0 : i32
    %c0_i32_0 = arith.constant 0 : i32
    %c0_i32_1 = arith.constant 0 : i32
    return %c0_i32, %c0_i32_0 : i32, i32
  }
  func.func @transform_2(%arg0: i32) -> (i32, i32) {
    %c0_i32 = arith.constant 0 : i32
    %c0_i32_0 = arith.constant 0 : i32
    %c0_i32_1 = arith.constant 0 : i32
    return %c0_i32, %c0_i32_0 : i32, i32
  }
  func.func @transform_3(%arg0: i32) -> (i32, i32) {
    %c0_i32 = arith.constant 0 : i32
    %c0_i32_0 = arith.constant 0 : i32
    %c0_i32_1 = arith.constant 0 : i32
    return %c0_i32, %c0_i32_0 : i32, i32
  }
  func.func @transform_4(%arg0: i32) -> (i32, i32) {
    %c0_i32 = arith.constant 0 : i32
    %c0_i32_0 = arith.constant 0 : i32
    %c0_i32_1 = arith.constant 0 : i32
    return %c0_i32, %c0_i32_0 : i32, i32
  }
  func.func @transform_5(%arg0: i32) -> (i32, i32) {
    %c0_i32 = arith.constant 0 : i32
    %c0_i32_0 = arith.constant 0 : i32
    return %arg0, %c0_i32 : i32, i32
  }
}

</mosaic_0001>

<bundles_post_ra>
// kernel: mlp_forward.1
= control target key start
LH: loop header
LB: loop body
LE: loop exit
PB: predicated region body
PF: predicated region fallthrough
CT: control target
= control target key end

     0   :  { %s2260_s18 = smov 0   ;;  %s2262_s19 = smov 0   ;;  %s3062_s0 = inlined_call_operand.vmem [shape: f32[394,64], index: 0, kind: input, shape index: {}]   ;;  %s3063_s1 = inlined_call_operand.vmem [shape: bf16[64,512], index: 1, kind: input, shape index: {}]   ;;  %s3064_s2 = inlined_call_operand.vmem [shape: f32[1,512], index: 2, kind: input, shape index: {}]   ;;  %s3065_s3 = inlined_call_operand.vmem [shape: bf16[512,64], index: 3, kind: input, shape index: {}]   ;;  %s3066_s4 = inlined_call_operand.vmem [shape: f32[1,64], index: 4, kind: input, shape index: {}]   ;;  %s3067_s5 = inlined_call_operand.vmem [shape: f32[394,64], index: 5, kind: output, shape index: {}]  }
   0x1   :  { %s2264_s20 = smov 0  }
   0x2 LB: > { %s2273_s21 = sadd.s32 4294967295, %s2195_s20   ;;  %s2275_s22 = sadd.s32 1, %s2195_s20   ;;  %s2195_s20 = sphi %s2264_s20, %s3082_s20   ;;  %s2191_s19 = sphi %s2262_s19, %s3081_s19   ;;  %s2187_s18 = sphi %s2260_s18, %s3080_s18  }
   0x3   : > { %s129_s23 = ssub.s32 %s2195_s20, %s2275_s22  ;;  %s132_s24 = sadd.s32 1, %s2191_s19 }
   0x4   : > { %p130_p0 = scmp.eq.s32.totalorder %s129_s23, 0  ;;  %p142_p1 = scmp.ne.s32.totalorder %s2191_s19, %s2187_s18 }
   0x5   : > { %p143_p2 = scmp.eq.s32.totalorder %s2273_s21, 3  ;;  %p1715_p3 = scmp.ge.s32.totalorder %s2195_s20, 1 }
   0x6   : > { %s2283_s25 = scalar_select %p130_p0, %s2191_s19, %s132_s24  }
   0x7   : > { %p2285_p4 = por %p143_p2, %p142_p1  ;;  %p196_p5 = scmp.lt.s32.totalorder %s2195_s20, 5 }
   0x9   : > { %p197_p6 = pnand %p1715_p3, %p196_p5 }
   0xa   : > { %v2021_v0 = vld [vmem:[%s3063_s1 + $0x4] ss:$16 sps:$4 sm:$0xff] (!%p197_p6)   ;;  %s2293_s29 = sshll.u32 (!%p197_p6), %s2273_s21, 4  ;;  %v2023_v1 = vld [vmem:[%s3063_s1 + $0xc] ss:$16 sps:$4 sm:$0xff] (!%p197_p6)   ;;  %v2229_v2 = vmov (!%p197_p6), 0  }
   0xb   : > { %200 = sbr.rel (%p197_p6) target bundleno = 631 (0x277), region = 40  ;;  %450 = vmatprep.mubr.bf16.mxu0 (!%p197_p6), %v2229_v2  ;;  %563 = vmatprep.mubr.bf16.mxu1 (!%p197_p6), %v2229_v2  ;;  %p232_p7 = scmp.lt.s32.totalorder (!%p197_p6), %s2293_s29, 49  ;;  %v2025_v3 = vld [vmem:[%s3063_s1] ss:$16 sps:$4 sm:$0xff] (!%p197_p6)   ;;  %v2026_v4 = vld [vmem:[%s3063_s1 + $0x8] ss:$16 sps:$4 sm:$0xff] (!%p197_p6)  }
   0xc   : > { %418 = vmatprep.subr.bf16.mxu0 (!%p197_p6), %v2021_v0  ;;  %531 = vmatprep.subr.bf16.mxu1 (!%p197_p6), %v2023_v1  ;;  %v2027_v5 = vld [vmem:[%s3063_s1 + $0x24] ss:$16 sps:$4 sm:$0xff] (!%p197_p6)   ;;  %v2029_v6 = vld [vmem:[%s3063_s1 + $0x2c] ss:$16 sps:$4 sm:$0xff] (!%p197_p6)   ;;  %v2031_v7 = vld [vmem:[%s3063_s1 + $0x20] ss:$16 sps:$4 sm:$0xff] (!%p197_p6)  }
   0xd   : > { %419 = vmatpush1.bf16.msra.mxu0 (!%p197_p6), %v2025_v3  ;;  %532 = vmatpush1.bf16.msra.mxu1 (!%p197_p6), %v2026_v4  ;;  %v2032_v8 = vld [vmem:[%s3063_s1 + $0x28] ss:$16 sps:$4 sm:$0xff] (!%p197_p6)   ;;  %v2033_v9 = vld [vmem:[%s3063_s1 + $0x44] ss:$16 sps:$4 sm:$0xff] (!%p197_p6)   ;;  %v2035_v10 = vld [vmem:[%s3063_s1 + $0x4c] ss:$16 sps:$4 sm:$0xff] (!%p197_p6)  }
   0xe   : > { %420 = vmatprep.subr.bf16.mxu0 (!%p197_p6), %v2027_v5  ;;  %533 = vmatprep.subr.bf16.mxu1 (!%p197_p6), %v2029_v6  ;;  %v2037_v11 = vld [vmem:[%s3063_s1 + $0x40] ss:$16 sps:$4 sm:$0xff] (!%p197_p6)   ;;  %v2038_v12 = vld [vmem:[%s3063_s1 + $0x48] ss:$16 sps:$4 sm:$0xff] (!%p197_p6)   ;;  %v2039_v13 = vld [vmem:[%s3063_s1 + $0x64] ss:$16 sps:$4 sm:$0xff] (!%p197_p6)  }
   0xf   : > { %v2041_v14 = vld [vmem:[%s3063_s1 + $0x6c] ss:$16 sps:$4 sm:$0xff] (!%p197_p6)   ;;  %v2043_v15 = vld [vmem:[%s3063_s1 + $0x60] ss:$16 sps:$4 sm:$0xff] (!%p197_p6)   ;;  %v2044_v16 = vld [vmem:[%s3063_s1 + $0x68] ss:$16 sps:$4 sm:$0xff] (!%p197_p6)  }
  0x10   : > { %vm393_vm0 = vcmask (!%p197_p6), 523264   ;;  %v2045_v20 = vld [vmem:[%s3065_s3 + $0x40] sm:$0xff] (!%p197_p6)   ;;  %v2049_v26 = vld [vmem:[%s3065_s3 + $0x48] sm:$0xff] (!%p197_p6)   ;;  %v2053_v31 = vld [vmem:[%s3065_s3 + $0x50] sm:$0xff] (!%p197_p6)   ;;  %s224_s20 = sand.u32 (!%p197_p6), 1, %s2187_s18  }
  0x11   : > { %421 = vmatpush1.bf16.msra.mxu0 (!%p197_p6), %v2031_v7  ;;  %534 = vmatpush1.bf16.msra.mxu1 (!%p197_p6), %v2032_v8  ;;  %v2046_v21 = vld [vmem:[%s3065_s3] sm:$0xff] (!%p197_p6)   ;;  %v2050_v27 = vld [vmem:[%s3065_s3 + $0x8] sm:$0xff] (!%p197_p6)   ;;  %v2054_v32 = vld [vmem:[%s3065_s3 + $0x10] sm:$0xff] (!%p197_p6)   ;;  %s1716_s27 = sshll.u32 (!%p197_p6), %s224_s20, 7 }
  0x12   : > { %s233_s13 = scalar_select %p232_p7, %s2293_s29, 49  ;;  %422 = vmatprep.subr.bf16.mxu0 %v2033_v9  ;;  %535 = vmatprep.subr.bf16.mxu1 %v2035_v10  ;;  %v2047_v24 = vld [vmem:[%s3065_s3 + $0xc0] sm:$0xff]   ;;  %v2051_v28 = vld [vmem:[%s3065_s3 + $0xc8] sm:$0xff]   ;;  %v2055_v35 = vld [vmem:[%s3065_s3 + $0xd0] sm:$0xff]   ;;  %v293_v9 = vlaneseq }
  0x13   : > { %v2048_v25 = vld [vmem:[%s3065_s3 + $0x80] sm:$0xff]   ;;  %v2052_v30 = vld [vmem:[%s3065_s3 + $0x88] sm:$0xff]   ;;  %v2056_v36 = vld [vmem:[%s3065_s3 + $0x90] sm:$0xff]   ;;  %s2914_s18 = scalar_lea.vmem [#allocation2], %s1716_s27   ;;  %s1801_s30 = sshll.u32 (%p2285_p4), %s2273_s21, 7 }
  0x14   : > { %s1718_s28 = sshll.u32 %s233_s13, 3  ;;  %v2057_v37 = vld [vmem:[%s3065_s3 + $0x58] sm:$0xff]   ;;  %v2061_v57 = vld [vmem:[%s3065_s3 + $0x60] sm:$0xff]   ;;  %v2065_v61 = vld [vmem:[%s3065_s3 + $0x68] sm:$0xff]   ;;  %v294_v10 = vshrl.u32 %v293_v9, 7  ;;  %s2969_s8 = scalar_lea.vmem (%p2285_p4), %s3067_s5, %s1801_s30  }
  0x15   : > { %s2341_s17 = scalar_lea.vmem %s3062_s0, %s1718_s28  ;;  %423 = vmatpush1.bf16.msra.mxu0 %v2037_v11  ;;  %536 = vmatpush1.bf16.msra.mxu1 %v2038_v12  ;;  %v2058_v38 = vld [vmem:[%s3065_s3 + $0x18] sm:$0xff]   ;;  %v2063_v58 = vld [vmem:[%s3065_s3 + $0xe0] sm:$0xff]   ;;  %v2067_v62 = vld [vmem:[%s3065_s3 + $0xe8] sm:$0xff]   ;;  %s1445_s28 = ssub.s32 (%p2285_p4), 50, %s2293_s29 }
  0x16   : > { %v251_v17 = vld [vmem:[%s2341_s17] sm:$0xff]  ;;  %v252_v18 = vld [vmem:[%s2341_s17 + $0x8] sm:$0xff]  ;;  %424 = vmatprep.subr.bf16.mxu0 %v2039_v13  ;;  %537 = vmatprep.subr.bf16.mxu1 %v2041_v14  ;;  %v253_v22 = vld [vmem:[%s2341_s17 + $0x10] sm:$0xff]  ;;  %v303_v11 = vsub.s32 2, %v294_v10  ;;  %v307_v12 = vsub.s32 3, %v294_v10  ;;  %v295_v13 = vsub.s32 0, %v294_v10 }
  0x17   : > { %v267_v19 = vpack.c.bf16 %v252_v18, %v251_v17  ;;  %v254_v23 = vld [vmem:[%s2341_s17 + $0x18] sm:$0xff]  ;;  %v255_v33 = vld [vmem:[%s2341_s17 + $0x20] sm:$0xff]  ;;  %v256_v34 = vld [vmem:[%s2341_s17 + $0x28] sm:$0xff]  ;;  %p1446_p8 = scmp.lt.s32.totalorder (%p2285_p4), %s1445_s28, 16 }
  0x18   : > { %v268_v29 = vpack.c.bf16 %v254_v23, %v253_v22  ;;  %v2059_v39 = vld [vmem:[%s3065_s3 + $0xd8] sm:$0xff]   ;;  %v269_v40 = vpack.c.bf16 %v256_v34, %v255_v33  ;;  %v257_v42 = vld [vmem:[%s2341_s17 + $0x30] sm:$0xff]  ;;  %v259_v45 = vld [vmem:[%s2341_s17 + $0x40] sm:$0xff] }
  0x19   : > { %425 = vmatpush1.bf16.msra.mxu0 %v2043_v15  ;;  %538 = vmatpush1.bf16.msra.mxu1 %v2044_v16  ;;  %v2060_v41 = vld [vmem:[%s3065_s3 + $0x98] sm:$0xff]   ;;  %v260_v46 = vld [vmem:[%s2341_s17 + $0x48] sm:$0xff]  ;;  %v261_v48 = vld [vmem:[%s2341_s17 + $0x50] sm:$0xff]  ;;  %v299_v15 = vsub.s32 1, %v294_v10 }
  0x1a   : > { %1804 = vmatprep.subr.bf16.mxu0 %v2045_v20  ;;  %1868 = vmatprep.subr.bf16.mxu1 %v2047_v24  ;;  %v258_v43 = vld [vmem:[%s2341_s17 + $0x38] sm:$0xff]  ;;  %v271_v47 = vpack.c.bf16 %v260_v46, %v259_v45  ;;  %v263_v51 = vld [vmem:[%s2341_s17 + $0x60] sm:$0xff]  ;;  %v264_v52 = vld [vmem:[%s2341_s17 + $0x68] sm:$0xff] }
  0x1b   : > { %v270_v44 = vpack.c.bf16 %v258_v43, %v257_v42  ;;  %v262_v49 = vld [vmem:[%s2341_s17 + $0x58] sm:$0xff]  ;;  %v273_v53 = vpack.c.bf16 %v264_v52, %v263_v51  ;;  %v265_v54 = vld [vmem:[%s2341_s17 + $0x70] sm:$0xff]  ;;  %v2062_v59 = vld [vmem:[%s3065_s3 + $0x20] sm:$0xff]  }
  0x1c   : > { %1735 = vmatmul.mubr.msk.bf16.vlgmr.msra.gmra.mrb[0].mxu0 %vm393_vm0, %v267_v19  ;;  %1743 = vmatmul.mubr.msk.bf16.vlgmr.msra.gmra.mrb[0].mxu1 %vm393_vm0, %v267_v19  ;;  %v272_v50 = vpack.c.bf16 %v262_v49, %v261_v48  ;;  %v266_v55 = vld [vmem:[%s2341_s17 + $0x78] sm:$0xff]  ;;  %v2064_v60 = vld [vmem:[%s3065_s3 + $0xa0] sm:$0xff]   ;;  %v2066_v63 = vld [vmem:[%s3065_s3 + $0x28] sm:$0xff]  }
  0x1d   : > { %460 = vmatprep.mubr.bf16.mxu0 %v2229_v2  ;;  %573 = vmatprep.mubr.bf16.mxu1 %v2229_v2  ;;  %v274_v56 = vpack.c.bf16 %v266_v55, %v265_v54  ;;  %v2068_v0 = vld [vmem:[%s3065_s3 + $0xa8] sm:$0xff]   ;;  %v2069_v1 = vld [vmem:[%s3065_s3 + $0x70] sm:$0xff]   ;;  %v2073_v5 = vld [vmem:[%s3065_s3 + $0x78] sm:$0xff]  }
  0x1e   : > { %1805 = vmatpush3.bf16.msra.mxu0 %v2046_v21  ;;  %1869 = vmatpush3.bf16.msra.mxu1 %v2048_v25  ;;  %v2070_v3 = vld [vmem:[%s3065_s3 + $0x30] sm:$0xff]   ;;  %v2075_v6 = vld [vmem:[%s3065_s3 + $0xf8] sm:$0xff]   ;;  %v291_v14 = vld [vmem:[%s3064_s2] sm:$0xf] }
  0x1f   : > { %1806 = vmatprep.subr.bf16.mxu0 %v2049_v26  ;;  %1870 = vmatprep.subr.bf16.mxu1 %v2051_v28  ;;  %v2072_v4 = vld [vmem:[%s3065_s3 + $0xb0] sm:$0xff]   ;;  %v2074_v7 = vld [vmem:[%s3065_s3 + $0x38] sm:$0xff]   ;;  %v2494_v16 = vrot.slane %v291_v14, %v303_v11  ;;  %v2496_v17 = vrot.slane %v291_v14, %v307_v12  ;;  %v2498_v18 = vrot.slane %v291_v14, %v295_v13 }
  0x20   : > { %v2076_v8 = vld [vmem:[%s3065_s3 + $0xb8] sm:$0xff]   ;;  %v2500_v21 = vrot.slane %v291_v14, %v299_v15 }
  0x22   : > { %1807 = vmatpush3.bf16.msra.mxu0 %v2050_v27  ;;  %1871 = vmatpush3.bf16.msra.mxu1 %v2052_v30 }
  0x23   : > { %1808 = vmatprep.subr.bf16.mxu0 %v2053_v31  ;;  %1872 = vmatprep.subr.bf16.mxu1 %v2055_v35 }
  0x24   : > { %1736 = vmatmul.mubr.msk.bf16.gmra.mrb[4].mxu0 %vm393_vm0, %v268_v29  ;;  %1744 = vmatmul.mubr.msk.bf16.gmra.mrb[4].mxu1 %vm393_vm0, %v268_v29 }
  0x25   : > { %470 = vmatprep.mubr.bf16.mxu0 %v2229_v2  ;;  %583 = vmatprep.mubr.bf16.mxu1 %v2229_v2 }
  0x26   : > { %1809 = vmatpush3.bf16.msra.mxu0 %v2054_v32  ;;  %1873 = vmatpush3.bf16.msra.mxu1 %v2056_v36 }
  0x27   : > { %1810 = vmatprep.subr.bf16.mxu0 %v2057_v37  ;;  %1874 = vmatprep.subr.bf16.mxu1 %v2059_v39 }
  0x2a   : > { %1811 = vmatpush3.bf16.msra.mxu0 %v2058_v38  ;;  %1875 = vmatpush3.bf16.msra.mxu1 %v2060_v41 }
  0x2b   : > { %1812 = vmatprep.subr.bf16.mxu0 %v2061_v57  ;;  %1876 = vmatprep.subr.bf16.mxu1 %v2063_v58 }
  0x2c   : > { %1737 = vmatmul.mubr.msk.bf16.gmra.mrb[8].mxu0 %vm393_vm0, %v269_v40  ;;  %1745 = vmatmul.mubr.msk.bf16.gmra.mrb[8].mxu1 %vm393_vm0, %v269_v40 }
  0x2d   : > { %480 = vmatprep.mubr.bf16.mxu0 %v2229_v2  ;;  %593 = vmatprep.mubr.bf16.mxu1 %v2229_v2 }
  0x2e   : > { %1813 = vmatpush3.bf16.msra.mxu0 %v2062_v59  ;;  %1877 = vmatpush3.bf16.msra.mxu1 %v2064_v60 }
  0x2f   : > { %1814 = vmatprep.subr.bf16.mxu0 %v2065_v61  ;;  %1878 = vmatprep.subr.bf16.mxu1 %v2067_v62 }
  0x32   : > { %1815 = vmatpush3.bf16.msra.mxu0 %v2066_v63  ;;  %1879 = vmatpush3.bf16.msra.mxu1 %v2068_v0 }
  0x33   : > { %1816 = vmatprep.subr.bf16.mxu0 %v2069_v1 }
  0x34   : > { %1738 = vmatmul.mubr.msk.bf16.gmra.mrb[12].mxu0 %vm393_vm0, %v270_v44  ;;  %1746 = vmatmul.mubr.msk.bf16.gmra.mrb[12].mxu1 %vm393_vm0, %v270_v44 }
  0x35   : > { %490 = vmatprep.mubr.bf16.mxu0 %v2229_v2  ;;  %603 = vmatprep.mubr.bf16.mxu1 %v2229_v2 }
  0x36   : > { %1817 = vmatpush3.bf16.msra.mxu0 %v2070_v3 }
  0x37   : > { %1818 = vmatprep.subr.bf16.mxu0 %v2073_v5 }
  0x3a   : > { %1819 = vmatpush3.bf16.msra.mxu0 %v2074_v7 }
  0x3c   : > { %1739 = vmatmul.mubr.msk.bf16.gmra.mrb[16].mxu0 %vm393_vm0, %v271_v47  ;;  %1747 = vmatmul.mubr.msk.bf16.gmra.mrb[16].mxu1 %vm393_vm0, %v271_v47 }
  0x3d   : > { %500 = vmatprep.mubr.bf16.mxu0 %v2229_v2  ;;  %613 = vmatprep.mubr.bf16.mxu1 %v2229_v2 }
  0x44   : > { %1740 = vmatmul.mubr.msk.bf16.gmra.mrb[20].mxu0 %vm393_vm0, %v272_v50  ;;  %1748 = vmatmul.mubr.msk.bf16.gmra.mrb[20].mxu1 %vm393_vm0, %v272_v50 }
  0x45   : > { %510 = vmatprep.mubr.bf16.mxu0 %v2229_v2  ;;  %623 = vmatprep.mubr.bf16.mxu1 %v2229_v2 }
  0x4c   : > { %1741 = vmatmul.mubr.msk.bf16.gmra.mrb[24].mxu0 %vm393_vm0, %v273_v53  ;;  %1749 = vmatmul.mubr.msk.bf16.gmra.mrb[24].mxu1 %vm393_vm0, %v273_v53 }
  0x4d   : > { %520 = vmatprep.mubr.bf16.mxu0 %v2229_v2  ;;  %633 = vmatprep.mubr.bf16.mxu1 %v2229_v2  ;;  %v2071_v2 = vld [vmem:[%s3065_s3 + $0xf0] sm:$0xff]  }
  0x4e   : > { %1880 = vmatprep.subr.bf16.mxu1 %v2071_v2 }
  0x4f   : > { %1881 = vmatpush3.bf16.msra.mxu1 %v2072_v4 }
  0x50   : > { %1882 = vmatprep.subr.bf16.mxu1 %v2075_v6 }
  0x53   : > { %1883 = vmatpush3.bf16.msra.mxu1 %v2076_v8 }
  0x54   : > { %1742 = vmatmul.mubr.msk.bf16.gmra.mrb[28].mxu0 %vm393_vm0, %v274_v56  ;;  %1750 = vmatmul.mubr.msk.bf16.gmra.mrb[28].mxu1 %vm393_vm0, %v274_v56 }
  0xef   : > { %v452_v19 = vpop.f32.mrb[0].mxu0  ;;  %v565_v20 = vpop.f32.mrb[0].mxu1 }
  0xf0   : > { %v566_v22 = vadd.f32 %v565_v20, %v2494_v16  ;;  %v454_v23 = vpop.f32.mrb[1].mxu0  ;;  %v567_v24 = vpop.f32.mrb[1].mxu1  ;;  %v453_v28 = vadd.f32 %v452_v19, %v2498_v18 }
  0xf1   : > { %v568_v25 = vadd.f32 %v567_v24, %v2496_v17  ;;  %v456_v26 = vpop.f32.mrb[2].mxu0  ;;  %v569_v27 = vpop.f32.mrb[2].mxu1  ;;  %v455_v33 = vadd.f32 %v454_v23, %v2500_v21 }
  0xf2   : > { %v457_v29 = vadd.f32 %v456_v26, %v2498_v18  ;;  %v570_v30 = vadd.f32 %v569_v27, %v2494_v16  ;;  %v458_v31 = vpop.f32.mrb[3].mxu0  ;;  %v571_v32 = vpop.f32.mrb[3].mxu1 }
  0xf3   : > { %v459_v34 = vadd.f32 %v458_v31, %v2500_v21  ;;  %v572_v35 = vadd.f32 %v571_v32, %v2496_v17 }
  0xf4   : > { %v2510_v36 = vpack.c.bf16 %v457_v29, %v453_v28  ;;  %v2512_v37 = vpack.c.bf16 %v570_v30, %v566_v22 }
  0xf5   : > { %v2514_v38 = vpack.c.bf16 %v459_v34, %v455_v33  ;;  %v2516_v39 = vpack.c.bf16 %v572_v35, %v568_v25 }
  0xf6   : > { %v676_v40 = vmul.bf16 %v2510_v36, %v2510_v36  ;;  %v678_v41 = vmul.bf16 %v2512_v37, %v2512_v37 }
  0xf7   : > { %v677_v42 = vmul.bf16 %v2514_v38, %v2514_v38  ;;  %v679_v43 = vmul.bf16 %v2516_v39, %v2516_v39  ;;  %v462_v44 = vpop.f32.mrb[4].mxu0  ;;  %v575_v45 = vpop.f32.mrb[4].mxu1 }
  0xf8   : > { %v708_v46 = vmul.bf16 %v676_v40, %v2510_v36  ;;  %v710_v47 = vmul.bf16 %v678_v41, %v2512_v37  ;;  %v463_v48 = vadd.f32 %v462_v44, %v2498_v18  ;;  %v576_v49 = vadd.f32 %v575_v45, %v2494_v16  ;;  %v464_v50 = vpop.f32.mrb[5].mxu0  ;;  %v577_v51 = vpop.f32.mrb[5].mxu1 }
  0xf9   : > { %v709_v52 = vmul.bf16 %v677_v42, %v2514_v38  ;;  %v711_v53 = vmul.bf16 %v679_v43, %v2516_v39  ;;  %v465_v54 = vadd.f32 %v464_v50, %v2500_v21  ;;  %v578_v55 = vadd.f32 %v577_v51, %v2496_v17  ;;  %v466_v56 = vpop.f32.mrb[6].mxu0  ;;  %v579_v57 = vpop.f32.mrb[6].mxu1 }
  0xfa   : > { %v740_v58 = vmul.bf16 1027030327, %v708_v46  ;;  %v742_v59 = vmul.bf16 1027030327, %v710_v47  ;;  %v467_v60 = vadd.f32 %v466_v56, %v2498_v18  ;;  %v580_v61 = vadd.f32 %v579_v57, %v2494_v16  ;;  %v468_v62 = vpop.f32.mrb[7].mxu0  ;;  %v581_v63 = vpop.f32.mrb[7].mxu1 }
  0xfb   : > { %v741_v0 = vmul.bf16 1027030327, %v709_v52  ;;  %v743_v1 = vmul.bf16 1027030327, %v711_v53  ;;  %v469_v2 = vadd.f32 %v468_v62, %v2500_v21  ;;  %v582_v3 = vadd.f32 %v581_v63, %v2496_v17 }
  0xfc   : > { %v772_v4 = vadd.bf16 %v740_v58, %v2510_v36  ;;  %v774_v5 = vadd.bf16 %v742_v59, %v2512_v37  ;;  %v2540_v6 = vpack.c.bf16 %v467_v60, %v463_v48  ;;  %v2542_v7 = vpack.c.bf16 %v580_v61, %v576_v49 }
  0xfd   : > { %v2544_v8 = vpack.c.bf16 %v469_v2, %v465_v54  ;;  %v2546_v9 = vpack.c.bf16 %v582_v3, %v578_v55  ;;  %v773_v10 = vadd.bf16 %v741_v0, %v2514_v38  ;;  %v775_v11 = vadd.bf16 %v743_v1, %v2516_v39 }
  0xfe   : > { %v804_v12 = vmul.bf16 1061961548, %v772_v4  ;;  %v806_v13 = vmul.bf16 1061961548, %v774_v5  ;;  %v680_v14 = vmul.bf16 %v2540_v6, %v2540_v6  ;;  %v682_v15 = vmul.bf16 %v2542_v7, %v2542_v7 }
  0xff   : > { %v681_v19 = vmul.bf16 %v2544_v8, %v2544_v8  ;;  %v683_v20 = vmul.bf16 %v2546_v9, %v2546_v9  ;;  %v472_v22 = vpop.f32.mrb[8].mxu0  ;;  %v585_v23 = vpop.f32.mrb[8].mxu1  ;;  %v805_v27 = vmul.bf16 1061961548, %v773_v10  ;;  %v807_v28 = vmul.bf16 1061961548, %v775_v11 }
 0x100   : > { %2077 = vtanh.bf16 %v804_v12  ;;  %v712_v24 = vmul.bf16 %v680_v14, %v2540_v6  ;;  %v474_v25 = vpop.f32.mrb[9].mxu0  ;;  %v587_v26 = vpop.f32.mrb[9].mxu1  ;;  %v586_v31 = vadd.f32 %v585_v23, %v2494_v16  ;;  %v2563_v35 = vmul.bf16 %v682_v15, %v2542_v7 }
 0x101   : > { %2079 = vtanh.bf16 %v806_v13  ;;  %v713_v29 = vmul.bf16 %v681_v19, %v2544_v8  ;;  %v715_v30 = vmul.bf16 %v683_v20, %v2546_v9  ;;  %v476_v32 = vpop.f32.mrb[10].mxu0  ;;  %v589_v33 = vpop.f32.mrb[10].mxu1  ;;  %v473_v40 = vadd.f32 %v472_v22, %v2498_v18 }
 0x102   : > { %v744_v34 = vmul.bf16 1027030327, %v712_v24  ;;  %v588_v41 = vadd.f32 %v587_v26, %v2496_v17  ;;  %v478_v42 = vpop.f32.mrb[11].mxu0  ;;  %v591_v43 = vpop.f32.mrb[11].mxu1  ;;  %v477_v46 = vadd.f32 %v476_v32, %v2498_v18  ;;  %v590_v47 = vadd.f32 %v589_v33, %v2494_v16 }
 0x103   : > { %v745_v44 = vmul.bf16 1027030327, %v713_v29  ;;  %v747_v45 = vmul.bf16 1027030327, %v715_v30  ;;  %v475_v48 = vadd.f32 %v474_v25, %v2500_v21  ;;  %v479_v49 = vadd.f32 %v478_v42, %v2500_v21 }
 0x104   : > { %v592_v50 = vadd.f32 %v591_v43, %v2496_v17  ;;  %v2573_v51 = vadd.bf16 %v744_v34, %v2540_v6  ;;  %v2575_v52 = vpack.c.bf16 %v477_v46, %v473_v40  ;;  %v2577_v53 = vpack.c.bf16 %v590_v47, %v586_v31 }
 0x105   : > { %v777_v54 = vadd.bf16 %v745_v44, %v2544_v8  ;;  %v746_v55 = vmul.bf16 1027030327, %v2563_v35  ;;  %v2581_v56 = vpack.c.bf16 %v479_v49, %v475_v48  ;;  %2081 = vtanh.bf16 %v805_v27 }
 0x106   : > { %v2583_v57 = vpack.c.bf16 %v592_v50, %v588_v41  ;;  %v684_v58 = vmul.bf16 %v2575_v52, %v2575_v52  ;;  %v686_v59 = vmul.bf16 %v2577_v53, %v2577_v53  ;;  %2083 = vtanh.bf16 %v807_v28 }
 0x107   : > { %v482_v60 = vpop.f32.mrb[12].mxu0  ;;  %v595_v61 = vpop.f32.mrb[12].mxu1  ;;  %v2590_v62 = vadd.bf16 %v747_v45, %v2546_v9  ;;  %v685_v63 = vmul.bf16 %v2581_v56, %v2581_v56  ;;  %v809_v3 = vmul.bf16 1061961548, %v777_v54  ;;  %v808_v4 = vmul.bf16 1061961548, %v2573_v51 }
 0x108   : > { %v687_v0 = vmul.bf16 %v2583_v57, %v2583_v57  ;;  %v484_v1 = vpop.f32.mrb[13].mxu0  ;;  %v597_v2 = vpop.f32.mrb[13].mxu1  ;;  %v2598_v5 = vmul.bf16 %v684_v58, %v2575_v52  ;;  %v2601_v10 = vmul.bf16 %v686_v59, %v2577_v53  ;;  %v596_v11 = vadd.f32 %v595_v61, %v2494_v16 }
 0x109   : > { %v598_v12 = vadd.f32 %v597_v2, %v2496_v17  ;;  %v486_v13 = vpop.f32.mrb[14].mxu0  ;;  %v599_v14 = vpop.f32.mrb[14].mxu1  ;;  %v2606_v15 = vmul.bf16 %v685_v63, %v2581_v56  ;;  %v483_v19 = vadd.f32 %v482_v60, %v2498_v18  ;;  %v485_v27 = vadd.f32 %v484_v1, %v2500_v21 }
 0x10a   : > { %v487_v20 = vadd.f32 %v486_v13, %v2498_v18  ;;  %v600_v22 = vadd.f32 %v599_v14, %v2494_v16  ;;  %v488_v23 = vpop.f32.mrb[15].mxu0  ;;  %v601_v24 = vpop.f32.mrb[15].mxu1  ;;  %v2612_v26 = vmul.bf16 %v687_v0, %v2583_v57  ;;  %v748_v32 = vmul.bf16 1027030327, %v2598_v5 }
 0x10b   : > { %v2078_v25 = vpop.eup %2077  ;;  %v489_v28 = vadd.f32 %v488_v23, %v2500_v21  ;;  %v602_v29 = vadd.f32 %v601_v24, %v2496_v17  ;;  %v750_v33 = vmul.bf16 1027030327, %v2601_v10  ;;  %v749_v44 = vmul.bf16 1027030327, %v2606_v15 }
 0x10c   : > { %v2080_v30 = vpop.eup %2079  ;;  %v868_v31 = vadd.bf16 1065369472, %v2078_v25  ;;  %v2619_v34 = vpack.c.bf16 %v487_v20, %v483_v19  ;;  %v2621_v40 = vpack.c.bf16 %v600_v22, %v596_v11  ;;  %2085 = vtanh.bf16 %v809_v3 }
 0x10d   : > { %v870_v35 = vadd.bf16 1065369472, %v2080_v30  ;;  %v2623_v41 = vpack.c.bf16 %v489_v28, %v485_v27  ;;  %v2625_v42 = vpack.c.bf16 %v602_v29, %v598_v12  ;;  %v751_v58 = vmul.bf16 1027030327, %v2612_v26 }
 0x10e   : > { %v2627_v43 = vmul.bf16 1056980736, %v868_v31  ;;  %v688_v45 = vmul.bf16 %v2619_v34, %v2619_v34  ;;  %v690_v47 = vmul.bf16 %v2621_v40, %v2621_v40  ;;  %v811_v63 = vmul.bf16 1061961548, %v2590_v62 }
 0x10f   : > { %v2632_v46 = vmul.bf16 1056980736, %v870_v35  ;;  %v689_v48 = vmul.bf16 %v2623_v41, %v2623_v41  ;;  %v691_v49 = vmul.bf16 %v2625_v42, %v2625_v42  ;;  %v492_v50 = vpop.f32.mrb[16].mxu0  ;;  %v605_v54 = vpop.f32.mrb[16].mxu1  ;;  %v2646_v0 = vadd.bf16 %v746_v55, %v2542_v7 }
 0x110   : > { %v2642_v59 = vmul.bf16 %v688_v45, %v2619_v34  ;;  %v494_v60 = vpop.f32.mrb[17].mxu0  ;;  %v607_v61 = vpop.f32.mrb[17].mxu1  ;;  %v932_v2 = vmul.bf16 %v2627_v43, %v2510_v36  ;;  %v2651_v3 = vmul.bf16 %v690_v47, %v2621_v40  ;;  %v493_v11 = vadd.f32 %v492_v50, %v2498_v18 }
 0x111   : > { %v2082_v1 = vpop.eup %2081  ;;  %v606_v12 = vadd.f32 %v605_v54, %v2494_v16  ;;  %v496_v13 = vpop.f32.mrb[18].mxu0  ;;  %v934_v62 = vmul.bf16 %v2632_v46, %v2512_v37  ;;  %v2658_v55 = vmul.bf16 %v689_v48, %v2623_v41  ;;  %v608_v20 = vadd.f32 %v607_v61, %v2496_v17 }
 0x112   : > { %v609_v14 = vpop.f32.mrb[18].mxu1  ;;  %v2084_v19 = vpop.eup %2083  ;;  %v497_v36 = vadd.f32 %v496_v13, %v2498_v18  ;;  %v752_v24 = vmul.bf16 1027030327, %v2642_v59  ;;  %v2664_v25 = vmul.bf16 %v691_v49, %v2625_v42  ;;  %v495_v27 = vadd.f32 %v494_v60, %v2500_v21 }
 0x113   : > { %v498_v22 = vpop.f32.mrb[19].mxu0  ;;  %v611_v23 = vpop.f32.mrb[19].mxu1  ;;  %v610_v28 = vadd.f32 %v609_v14, %v2494_v16  ;;  %v869_v31 = vadd.bf16 1065369472, %v2082_v1  ;;  %v871_v45 = vadd.bf16 1065369472, %v2084_v19  ;;  %2087 = vtanh.bf16 %v811_v63 }
 0x114   : > { %v2668_v29 = vpack.c.bf16 %v497_v36, %v493_v11  ;;  %v499_v37 = vadd.f32 %v498_v22, %v2500_v21  ;;  %v612_v30 = vadd.f32 %v611_v23, %v2496_v17  ;;  %v753_v50 = vmul.bf16 1027030327, %v2658_v55 }
 0x115   : > { %v2673_v43 = vpack.c.bf16 %v610_v28, %v606_v12  ;;  %v901_v49 = vmul.bf16 1056980736, %v869_v31  ;;  %v903_v60 = vmul.bf16 1056980736, %v871_v45  ;;  %2089 = vtanh.bf16 %v808_v4 }
 0x116   : > { %v692_v46 = vmul.bf16 %v2668_v29, %v2668_v29  ;;  %v2677_v47 = vpack.c.bf16 %v499_v37, %v495_v27  ;;  %v2679_v48 = vpack.c.bf16 %v612_v30, %v608_v20  ;;  %v810_v23 = vmul.bf16 1061961548, %v2646_v0 }
 0x117   : > { %v694_v54 = vmul.bf16 %v2673_v43, %v2673_v43  ;;  %v502_v61 = vpop.f32.mrb[20].mxu0  ;;  %v615_v1 = vpop.f32.mrb[20].mxu1  ;;  %v933_v13 = vmul.bf16 %v901_v49, %v2514_v38  ;;  %v935_v36 = vmul.bf16 %v903_v60, %v2516_v39  ;;  %v2700_v27 = vadd.bf16 %v749_v44, %v2581_v56 }
 0x118   : > { %v2687_v63 = vmul.bf16 %v692_v46, %v2668_v29  ;;  %v693_v11 = vmul.bf16 %v2677_v47, %v2677_v47  ;;  %v695_v12 = vmul.bf16 %v2679_v48, %v2679_v48  ;;  %v504_v14 = vpop.f32.mrb[21].mxu0  ;;  %v617_v19 = vpop.f32.mrb[21].mxu1  ;;  %v616_v22 = vadd.f32 %v615_v1, %v2494_v16 }
 0x119   : > { %v2086_v20 = vpop.eup %2085  ;;  %v506_v51 = vpop.f32.mrb[22].mxu0  ;;  %v2703_v28 = vmul.bf16 %v694_v54, %v2673_v43  ;;  %1259 = vmatprep.mubr.bf16.mxu0 %v933_v13  ;;  %v503_v39 = vadd.f32 %v502_v61, %v2498_v18  ;;  %v755_v0 = vmul.bf16 1027030327, %v2664_v25  ;;  %1356 = vmatprep.mubr.bf16.mxu1 %v935_v36  ;;  %v618_v15 = vadd.f32 %v617_v19, %v2496_v17 }
 0x11a   : > { %v619_v4 = vpop.f32.mrb[22].mxu1  ;;  %v2706_v38 = vmul.bf16 %v693_v11, %v2677_v47  ;;  %v2709_v37 = vmul.bf16 %v695_v12, %v2679_v48  ;;  %v508_v30 = vpop.f32.mrb[23].mxu0  ;;  %1260 = vmatmul.mubr.bf16.vlgmr.msra.gmra.mrb[32].mxu0 %v932_v2  ;;  %v507_v44 = vadd.f32 %v506_v51, %v2498_v18  ;;  %1357 = vmatmul.mubr.bf16.vlgmr.msra.gmra.mrb[32].mxu1 %v934_v62  ;;  %v873_v2 = vadd.bf16 1065369472, %v2086_v20 }
 0x11b   : > { %v621_v31 = vpop.f32.mrb[23].mxu1  ;;  %v620_v45 = vadd.f32 %v619_v4, %v2494_v16  ;;  %v505_v49 = vadd.f32 %v504_v14, %v2500_v21  ;;  %v509_v54 = vadd.f32 %v508_v30, %v2500_v21  ;;  %2091 = vtanh.bf16 %v810_v23 }
 0x11c   : > { %v622_v60 = vadd.f32 %v621_v31, %v2496_v17  ;;  %v2720_v61 = vpack.c.bf16 %v507_v44, %v503_v39  ;;  %v3070_v59 = vmul.bf16 1027030327, %v2706_v38 }
 0x11d   : > { %v2722_v1 = vpack.c.bf16 %v620_v45, %v616_v22  ;;  %v2726_v13 = vpack.c.bf16 %v509_v54, %v505_v49  ;;  %v905_v22 = vmul.bf16 1056980736, %v873_v2  ;;  %v813_v2 = vmul.bf16 1061961548, %v2700_v27 }
 0x11e   : > { %v2728_v19 = vpack.c.bf16 %v622_v60, %v618_v15  ;;  %v696_v14 = vmul.bf16 %v2720_v61, %v2720_v61  ;;  %v2088_v4 = vpop.eup %2087 }
 0x11f   : > { %v698_v36 = vmul.bf16 %v2722_v1, %v2722_v1  ;;  %v512_v51 = vpop.f32.mrb[24].mxu0  ;;  %v625_v20 = vpop.f32.mrb[24].mxu1  ;;  %v697_v23 = vmul.bf16 %v2726_v13, %v2726_v13  ;;  %v937_v45 = vmul.bf16 %v905_v22, %v2544_v8  ;;  %v875_v49 = vadd.bf16 1065369472, %v2088_v4 }
 0x120   : > { %v699_v39 = vmul.bf16 %v2728_v19, %v2728_v19  ;;  %v513_v30 = vadd.f32 %v512_v51, %v2498_v18  ;;  %v626_v31 = vadd.f32 %v625_v20, %v2494_v16  ;;  %v514_v15 = vpop.f32.mrb[25].mxu0  ;;  %v627_v44 = vpop.f32.mrb[25].mxu1  ;;  %v783_v51 = vadd.bf16 %v751_v58, %v2583_v57 }
 0x121   : > { %v516_v54 = vpop.f32.mrb[26].mxu0  ;;  %v629_v60 = vpop.f32.mrb[26].mxu1  ;;  %v515_v46 = vadd.f32 %v514_v15, %v2500_v21  ;;  %v628_v62 = vadd.f32 %v627_v44, %v2496_v17  ;;  %v780_v8 = vadd.bf16 %v748_v32, %v2575_v52  ;;  %v2752_v22 = vmul.bf16 %v696_v14, %v2720_v61  ;;  %1267 = vmatprep.mubr.bf16.mxu0 %v937_v45 }
 0x122   : > { %v2090_v11 = vpop.eup %2089  ;;  %v518_v12 = vpop.f32.mrb[27].mxu0  ;;  %v2755_v27 = vmul.bf16 %v698_v36, %v2722_v1  ;;  %v907_v20 = vmul.bf16 1056980736, %v875_v49  ;;  %v517_v4 = vadd.f32 %v516_v54, %v2498_v18  ;;  %v2759_v15 = vmul.bf16 %v697_v23, %v2726_v13 }
 0x123   : > { %v631_v35 = vpop.f32.mrb[27].mxu1  ;;  %v2762_v26 = vmul.bf16 %v699_v39, %v2728_v19  ;;  %v872_v58 = vadd.bf16 1065369472, %v2090_v11  ;;  %v630_v5 = vadd.f32 %v629_v60, %v2494_v16  ;;  %v519_v36 = vadd.f32 %v518_v12, %v2500_v21 }
 0x124   : > { %v939_v32 = vmul.bf16 %v907_v20, %v2546_v9  ;;  %v2766_v14 = vpack.c.bf16 %v517_v4, %v513_v30  ;;  %v632_v44 = vadd.f32 %v631_v35, %v2496_v17  ;;  %2093 = vtanh.bf16 %v813_v2 }
 0x125   : > { %v904_v45 = vmul.bf16 1056980736, %v872_v58  ;;  %v2770_v49 = vpack.c.bf16 %v630_v5, %v626_v31  ;;  %v815_v23 = vmul.bf16 1061961548, %v783_v51  ;;  %v2774_v11 = vpack.c.bf16 %v519_v36, %v515_v46 }
 0x126   : > { %1364 = vmatprep.mubr.bf16.mxu1 %v939_v32  ;;  %v700_v39 = vmul.bf16 %v2766_v14, %v2766_v14  ;;  %v2776_v54 = vpack.c.bf16 %v632_v44, %v628_v62  ;;  %v812_v9 = vmul.bf16 1061961548, %v780_v8  ;;  %v2092_v20 = vpop.eup %2091  ;;  %v782_v31 = vadd.bf16 %v750_v33, %v2577_v53 }
 0x127   : > { %v522_v30 = vpop.f32.mrb[28].mxu0  ;;  %v635_v60 = vpop.f32.mrb[28].mxu1  ;;  %v936_v12 = vmul.bf16 %v904_v45, %v2540_v6  ;;  %v702_v35 = vmul.bf16 %v2770_v49, %v2770_v49  ;;  %2095 = vtanh.bf16 %v815_v23  ;;  %v874_v62 = vadd.bf16 1065369472, %v2092_v20 }
 0x128   : > { %v524_v2 = vpop.f32.mrb[29].mxu0  ;;  %v637_v51 = vpop.f32.mrb[29].mxu1  ;;  %v2786_v8 = vmul.bf16 %v700_v39, %v2766_v14  ;;  %v701_v4 = vmul.bf16 %v2774_v11, %v2774_v11  ;;  %2097 = vtanh.bf16 %v812_v9  ;;  %v814_v32 = vmul.bf16 1061961548, %v782_v31 }
 0x129   : > { %v526_v6 = vpop.f32.mrb[30].mxu0  ;;  %v639_v58 = vpop.f32.mrb[30].mxu1  ;;  %1268 = vmatmul.mubr.bf16.gmra.mrb[36].mxu0 %v936_v12  ;;  %v523_v10 = vadd.f32 %v522_v30, %v2498_v18  ;;  %v761_v44 = vmul.bf16 1027030327, %v2759_v15  ;;  %v906_v23 = vmul.bf16 1056980736, %v874_v62  ;;  %v703_v39 = vmul.bf16 %v2776_v54, %v2776_v54 }
 0x12a   : > { %v528_v33 = vpop.f32.mrb[31].mxu0  ;;  %v641_v36 = vpop.f32.mrb[31].mxu1  ;;  %v2797_v20 = vmul.bf16 %v702_v35, %v2770_v49  ;;  %2099 = vtanh.bf16 %v814_v32  ;;  %v636_v12 = vadd.f32 %v635_v60, %v2494_v16  ;;  %v525_v9 = vadd.f32 %v524_v2, %v2500_v21 }
 0x12b   : > { %v938_v30 = vmul.bf16 %v906_v23, %v2542_v7  ;;  %v764_v31 = vmul.bf16 1027030327, %v2786_v8  ;;  %v2804_v5 = vmul.bf16 %v701_v4, %v2774_v11  ;;  %v638_v62 = vadd.f32 %v637_v51, %v2496_v17 }
 0x12c   : > { %v527_v46 = vadd.f32 %v526_v6, %v2498_v18  ;;  %v640_v45 = vadd.f32 %v639_v58, %v2494_v16  ;;  %v529_v35 = vadd.f32 %v528_v33, %v2500_v21  ;;  %v642_v32 = vadd.f32 %v641_v36, %v2496_v17 }
 0x12d   : > { %1365 = vmatmul.mubr.bf16.gmra.mrb[36].mxu1 %v938_v30  ;;  %v785_v7 = vadd.bf16 %v753_v50, %v2623_v41  ;;  %v787_v60 = vadd.bf16 %v755_v0, %v2625_v42  ;;  %v784_v2 = vadd.bf16 %v752_v24, %v2619_v34  ;;  %v3069_v16 = vmul.bf16 1027030327, %v2651_v3 }
 0x12e   : > { %v2823_v21 = vpack.c.bf16 %v527_v46, %v523_v10  ;;  %v2825_v17 = vpack.c.bf16 %v640_v45, %v636_v12  ;;  %v2827_v51 = vpack.c.bf16 %v529_v35, %v525_v9  ;;  %v2829_v55 = vpack.c.bf16 %v642_v32, %v638_v62 }
 0x12f   : > { %v786_v18 = vadd.bf16 %v3069_v16, %v2621_v40  ;;  %v2094_v50 = vpop.eup %2093  ;;  %v735_v25 = vmul.bf16 %v703_v39, %v2776_v54  ;;  %v817_v0 = vmul.bf16 1061961548, %v785_v7  ;;  %v819_v4 = vmul.bf16 1061961548, %v787_v60 }
 0x130   : > { %v789_v24 = vadd.bf16 %v3070_v59, %v2677_v47  ;;  %v766_v3 = vmul.bf16 1027030327, %v2797_v20  ;;  %v765_v46 = vmul.bf16 1027030327, %v2804_v5  ;;  %v877_v6 = vadd.bf16 1065369472, %v2094_v50 }
 0x131   : > { %v705_v58 = vmul.bf16 %v2827_v51, %v2827_v51  ;;  %v707_v33 = vmul.bf16 %v2829_v55, %v2829_v55  ;;  %2101 = vtanh.bf16 %v817_v0  ;;  %v816_v36 = vmul.bf16 1061961548, %v784_v2 }
 0x132   : > { %v2096_v10 = vpop.eup %2095  ;;  %v818_v45 = vmul.bf16 1061961548, %v786_v18  ;;  %v909_v23 = vmul.bf16 1056980736, %v877_v6  ;;  %v821_v12 = vmul.bf16 1061961548, %v789_v24  ;;  %2103 = vtanh.bf16 %v819_v4 }
 0x133   : > { %v879_v39 = vadd.bf16 1065369472, %v2096_v10  ;;  %v2098_v38 = vpop.eup %2097  ;;  %v737_v9 = vmul.bf16 %v705_v58, %v2827_v51  ;;  %v739_v30 = vmul.bf16 %v707_v33, %v2829_v55  ;;  %v3071_v5 = vmul.bf16 1027030327, %v2709_v37 }
 0x134   : > { %v767_v35 = vmul.bf16 1027030327, %v735_v25  ;;  %v941_v32 = vmul.bf16 %v909_v23, %v2581_v56  ;;  %v876_v60 = vadd.bf16 1065369472, %v2098_v38  ;;  %v704_v16 = vmul.bf16 %v2823_v21, %v2823_v21 }
 0x135   : > { %v791_v62 = vadd.bf16 %v3071_v5, %v2679_v48  ;;  %v911_v7 = vmul.bf16 1056980736, %v879_v39  ;;  %v2100_v2 = vpop.eup %2099  ;;  %v769_v18 = vmul.bf16 1027030327, %v737_v9  ;;  %v771_v50 = vmul.bf16 1027030327, %v739_v30 }
 0x136   : > { %2105 = vtanh.bf16 %v816_v36  ;;  %1275 = vmatprep.mubr.bf16.mxu0 %v941_v32  ;;  %v908_v4 = vmul.bf16 1056980736, %v876_v60  ;;  %v878_v59 = vadd.bf16 1065369472, %v2100_v2  ;;  %v3072_v56 = vmul.bf16 1027030327, %v2687_v63 }
 0x137   : > { %v943_v0 = vmul.bf16 %v911_v7, %v2583_v57  ;;  %2107 = vtanh.bf16 %v818_v45  ;;  %v823_v37 = vmul.bf16 1061961548, %v791_v62  ;;  %v3073_v24 = vmul.bf16 1027030327, %v2703_v28 }
 0x138   : > { %2109 = vtanh.bf16 %v821_v12  ;;  %v788_v25 = vadd.bf16 %v3072_v56, %v2668_v29  ;;  %v940_v58 = vmul.bf16 %v908_v4, %v2575_v52  ;;  %v910_v10 = vmul.bf16 1056980736, %v878_v59 }
 0x139   : > { %v790_v6 = vadd.bf16 %v3073_v24, %v2673_v43  ;;  %1372 = vmatprep.mubr.bf16.mxu1 %v943_v0  ;;  %v793_v57 = vadd.bf16 %v761_v44, %v2726_v13  ;;  %v3074_v33 = vmul.bf16 1027030327, %v2762_v26  ;;  %2111 = vtanh.bf16 %v823_v37 }
 0x13a   : > { %v820_v45 = vmul.bf16 1061961548, %v788_v25  ;;  %v3075_v23 = vmul.bf16 1027030327, %v2752_v22  ;;  %1276 = vmatmul.mubr.bf16.gmra.mrb[40].mxu0 %v940_v58  ;;  %v942_v39 = vmul.bf16 %v910_v10, %v2577_v53  ;;  %v3076_v15 = vmul.bf16 1027030327, %v2755_v27 }
 0x13b   : > { %v795_v36 = vadd.bf16 %v3074_v33, %v2728_v19  ;;  %v822_v63 = vmul.bf16 1061961548, %v790_v6  ;;  %v825_v52 = vmul.bf16 1061961548, %v793_v57  ;;  %v797_v26 = vadd.bf16 %v765_v46, %v2774_v11 }
 0x13c   : > { %v792_v28 = vadd.bf16 %v3075_v23, %v2720_v61  ;;  %v794_v44 = vadd.bf16 %v3076_v15, %v2722_v1  ;;  %2113 = vtanh.bf16 %v820_v45  ;;  %v799_v9 = vadd.bf16 %v767_v35, %v2776_v54  ;;  %v2102_v30 = vpop.eup %2101  ;;  %1373 = vmatmul.mubr.bf16.gmra.mrb[40].mxu1 %v942_v39 }
 0x13d   : > { %v827_v12 = vmul.bf16 1061961548, %v795_v36  ;;  %v706_v22 = vmul.bf16 %v2825_v17, %v2825_v17  ;;  %2115 = vtanh.bf16 %v822_v63  ;;  %v796_v53 = vadd.bf16 %v764_v31, %v2766_v14  ;;  %v2104_v32 = vpop.eup %2103 }
 0x13e   : > { %v824_v38 = vmul.bf16 1061961548, %v792_v28  ;;  %v826_v5 = vmul.bf16 1061961548, %v794_v44  ;;  %v881_v62 = vadd.bf16 1065369472, %v2102_v30  ;;  %2117 = vtanh.bf16 %v825_v52 }
 0x13f   : > { %v829_v27 = vmul.bf16 1061961548, %v797_v26  ;;  %v736_v7 = vmul.bf16 %v704_v16, %v2823_v21  ;;  %2119 = vtanh.bf16 %v827_v12  ;;  %v831_v46 = vmul.bf16 1061961548, %v799_v9 }
 0x140   : > { %v801_v35 = vadd.bf16 %v769_v18, %v2827_v51  ;;  %v913_v60 = vmul.bf16 1056980736, %v881_v62  ;;  %v883_v2 = vadd.bf16 1065369472, %v2104_v32  ;;  %2121 = vtanh.bf16 %v824_v38 }
 0x141   : > { %v803_v0 = vadd.bf16 %v771_v50, %v2829_v55  ;;  %v2106_v4 = vpop.eup %2105  ;;  %v738_v59 = vmul.bf16 %v706_v22, %v2825_v17  ;;  %2123 = vtanh.bf16 %v826_v5  ;;  %v828_v8 = vmul.bf16 1061961548, %v796_v53 }
 0x142   : > { %v798_v31 = vadd.bf16 %v766_v3, %v2770_v49  ;;  %v2108_v37 = vpop.eup %2107  ;;  %v945_v16 = vmul.bf16 %v913_v60, %v2623_v41  ;;  %v915_v56 = vmul.bf16 1056980736, %v883_v2  ;;  %v880_v25 = vadd.bf16 1065369472, %v2106_v4 }
 0x143   : > { %2125 = vtanh.bf16 %v829_v27  ;;  %v2110_v18 = vpop.eup %2109  ;;  %v768_v24 = vmul.bf16 1027030327, %v736_v7  ;;  %v882_v6 = vadd.bf16 1065369472, %v2108_v37  ;;  %v833_v50 = vmul.bf16 1061961548, %v801_v35 }
 0x144   : > { %2127 = vtanh.bf16 %v831_v46  ;;  %1283 = vmatprep.mubr.bf16.mxu0 %v945_v16  ;;  %v947_v58 = vmul.bf16 %v915_v56, %v2625_v42  ;;  %v912_v10 = vmul.bf16 1056980736, %v880_v25  ;;  %v885_v57 = vadd.bf16 1065369472, %v2110_v18  ;;  %v2112_v36 = vpop.eup %2111 }
 0x145   : > { %v835_v33 = vmul.bf16 1061961548, %v803_v0  ;;  %v770_v20 = vmul.bf16 1027030327, %v738_v59  ;;  %v914_v3 = vmul.bf16 1056980736, %v882_v6  ;;  %2129 = vtanh.bf16 %v828_v8 }
 0x146   : > { %v830_v45 = vmul.bf16 1061961548, %v798_v31  ;;  %1380 = vmatprep.mubr.bf16.mxu1 %v947_v58  ;;  %v944_v41 = vmul.bf16 %v912_v10, %v2619_v34  ;;  %v917_v63 = vmul.bf16 1056980736, %v885_v57  ;;  %v887_v23 = vadd.bf16 1065369472, %v2112_v36 }
 0x147   : > { %v2114_v28 = vpop.eup %2113  ;;  %v946_v39 = vmul.bf16 %v914_v3, %v2621_v40  ;;  %2131 = vtanh.bf16 %v833_v50  ;;  %v800_v52 = vadd.bf16 %v768_v24, %v2823_v21  ;;  %v802_v34 = vadd.bf16 %v770_v20, %v2825_v17 }
 0x148   : > { %v2116_v42 = vpop.eup %2115  ;;  %1284 = vmatmul.mubr.bf16.gmra.mrb[44].mxu0 %v944_v41  ;;  %v949_v12 = vmul.bf16 %v917_v63, %v2677_v47  ;;  %v919_v15 = vmul.bf16 1056980736, %v887_v23  ;;  %v884_v44 = vadd.bf16 1065369472, %v2114_v28  ;;  %2133 = vtanh.bf16 %v835_v33 }
 0x149   : > { %v2118_v38 = vpop.eup %2117  ;;  %1381 = vmatmul.mubr.bf16.gmra.mrb[44].mxu1 %v946_v39  ;;  %v886_v26 = vadd.bf16 1065369472, %v2116_v42  ;;  %2135 = vtanh.bf16 %v830_v45  ;;  %v832_v32 = vmul.bf16 1061961548, %v800_v52  ;;  %v834_v35 = vmul.bf16 1061961548, %v802_v34 }
 0x14a   : > { %v2120_v9 = vpop.eup %2119  ;;  %1291 = vmatprep.mubr.bf16.mxu0 %v949_v12  ;;  %v951_v40 = vmul.bf16 %v919_v15, %v2679_v48  ;;  %v916_v30 = vmul.bf16 1056980736, %v884_v44  ;;  %v889_v22 = vadd.bf16 1065369472, %v2118_v38 }
 0x14b   : > { %v2122_v5 = vpop.eup %2121  ;;  %v918_v53 = vmul.bf16 1056980736, %v886_v26  ;;  %v891_v62 = vadd.bf16 1065369472, %v2120_v9  ;;  %2137 = vtanh.bf16 %v832_v32 }
 0x14c   : > { %v2124_v27 = vpop.eup %2123  ;;  %1388 = vmatprep.mubr.bf16.mxu1 %v951_v40  ;;  %v921_v47 = vmul.bf16 1056980736, %v889_v22  ;;  %v948_v2 = vmul.bf16 %v916_v30, %v2668_v29  ;;  %v888_v4 = vadd.bf16 1065369472, %v2122_v5  ;;  %2139 = vtanh.bf16 %v834_v35 }
 0x14d   : > { %v923_v46 = vmul.bf16 1056980736, %v891_v62  ;;  %v950_v48 = vmul.bf16 %v918_v53, %v2673_v43  ;;  %v890_v31 = vadd.bf16 1065369472, %v2124_v27 }
 0x14e   : > { %v2126_v7 = vpop.eup %2125  ;;  %v953_v0 = vmul.bf16 %v921_v47, %v2726_v13  ;;  %v920_v29 = vmul.bf16 1056980736, %v888_v4 }
 0x14f   : > { %v2128_v60 = vpop.eup %2127  ;;  %v893_v59 = vadd.bf16 1065369472, %v2126_v7  ;;  %v955_v8 = vmul.bf16 %v923_v46, %v2728_v19  ;;  %v922_v24 = vmul.bf16 1056980736, %v890_v31 }
 0x150   : > { %v895_v37 = vadd.bf16 1065369472, %v2128_v60  ;;  %1292 = vmatmul.mubr.bf16.gmra.mrb[48].mxu0 %v948_v2  ;;  %v2130_v16 = vpop.eup %2129  ;;  %v952_v19 = vmul.bf16 %v920_v29, %v2720_v61 }
 0x151   : > { %1389 = vmatmul.mubr.bf16.gmra.mrb[48].mxu1 %v950_v48  ;;  %1299 = vmatprep.mubr.bf16.mxu0 %v953_v0  ;;  %v925_v56 = vmul.bf16 1056980736, %v893_v59  ;;  %v892_v10 = vadd.bf16 1065369472, %v2130_v16  ;;  %v954_v33 = vmul.bf16 %v922_v24, %v2722_v1 }
 0x152   : > { %v2132_v25 = vpop.eup %2131  ;;  %1396 = vmatprep.mubr.bf16.mxu1 %v955_v8  ;;  %v927_v18 = vmul.bf16 1056980736, %v895_v37 }
 0x153   : > { %v2134_v13 = vpop.eup %2133  ;;  %v957_v43 = vmul.bf16 %v925_v56, %v2774_v11  ;;  %v897_v50 = vadd.bf16 1065369472, %v2132_v25  ;;  %v924_v3 = vmul.bf16 1056980736, %v892_v10 }
 0x154   : > { %v2136_v6 = vpop.eup %2135  ;;  %v959_v58 = vmul.bf16 %v927_v18, %v2776_v54  ;;  %v899_v57 = vadd.bf16 1065369472, %v2134_v13 }
 0x155   : > { %v894_v36 = vadd.bf16 1065369472, %v2136_v6  ;;  %v929_v20 = vmul.bf16 1056980736, %v897_v50  ;;  %v956_v61 = vmul.bf16 %v924_v3, %v2766_v14 }
 0x156   : > { %v931_v45 = vmul.bf16 1056980736, %v899_v57  ;;  %v2138_v41 = vpop.eup %2137 }
 0x157   : > { %v926_v63 = vmul.bf16 1056980736, %v894_v36  ;;  %v2140_v11 = vpop.eup %2139  ;;  %v961_v23 = vmul.bf16 %v929_v20, %v2827_v51  ;;  %v896_v28 = vadd.bf16 1065369472, %v2138_v41 }
 0x158   : > { %1300 = vmatmul.mubr.bf16.gmra.mrb[52].mxu0 %v952_v19  ;;  %v963_v54 = vmul.bf16 %v931_v45, %v2829_v55  ;;  %v898_v39 = vadd.bf16 1065369472, %v2140_v11 }
 0x159   : > { %1397 = vmatmul.mubr.bf16.gmra.mrb[52].mxu1 %v954_v33  ;;  %1307 = vmatprep.mubr.bf16.mxu0 %v957_v43  ;;  %v958_v1 = vmul.bf16 %v926_v63, %v2770_v49  ;;  %v928_v52 = vmul.bf16 1056980736, %v896_v28  ;;  %v2910_v49 = vld [vmem:[%s3066_s4] ss:$0 sm:$0xff] }
 0x15a   : > { %1404 = vmatprep.mubr.bf16.mxu1 %v959_v58  ;;  %v930_v42 = vmul.bf16 1056980736, %v898_v39 }
 0x15b   : > { %v960_v12 = vmul.bf16 %v928_v52, %v2823_v21 }
 0x15c   : > { %v962_v15 = vmul.bf16 %v930_v42, %v2825_v17 }
 0x160   : > { %1308 = vmatmul.mubr.bf16.gmra.mrb[56].mxu0 %v956_v61 }
 0x161   : > { %1405 = vmatmul.mubr.bf16.gmra.mrb[56].mxu1 %v958_v1  ;;  %1315 = vmatprep.mubr.bf16.mxu0 %v961_v23 }
 0x162   : > { %1412 = vmatprep.mubr.bf16.mxu1 %v963_v54 }
 0x168   : > { %1316 = vmatmul.mubr.bf16.gmra.mrb[60].mxu0 %v960_v12 }
 0x169   : > { %1413 = vmatmul.mubr.bf16.gmra.mrb[60].mxu1 %v962_v15 }
 0x1ed   : > { %v1820_v14 = vpop.f32.mrb[32].mxu0  ;;  %v1884_v51 = vpop.f32.mrb[32].mxu1 }
 0x1ee   : > { %v1821_v55 = vpop.f32.mrb[33].mxu0  ;;  %v1885_v38 = vpop.f32.mrb[33].mxu1 }
 0x1ef   : > { %v1822_v44 = vadd.f32 %v1821_v55, %v1820_v14  ;;  %v1823_v26 = vpop.f32.mrb[34].mxu0  ;;  %v1886_v34 = vadd.f32 %v1885_v38, %v1884_v51  ;;  %v1887_v9 = vpop.f32.mrb[34].mxu1 }
 0x1f0   : > { %v1824_v21 = vpop.f32.mrb[35].mxu0  ;;  %v1888_v30 = vpop.f32.mrb[35].mxu1 }
 0x1f1   : > { %v1262_v17 = vadd.f32 %v1822_v44, %v2910_v49  ;;  %v1825_v40 = vadd.f32 %v1824_v21, %v1823_v26  ;;  %v1889_v22 = vadd.f32 %v1888_v30, %v1887_v9 }
 0x1f3   : > { %v1359_v5 = vadd.f32 %v1886_v34, %v1262_v17  ;;  %v1265_v53 = vadd.f32 %v1825_v40, %v2910_v49 }
 0x1f5   : > { %1421 = vst.msk [vmem:[%s2914_s18] sm:$0xff] %vm393_vm0, %v1359_v5  ;;  %v1362_v62 = vadd.f32 %v1889_v22, %v1265_v53 }
 0x1f7   : > { %1422 = vst.msk [vmem:[%s2914_s18 + $0x8] sm:$0xff] %vm393_vm0, %v1362_v62 }
 0x1fc   : > { %v1826_v27 = vpop.f32.mrb[36].mxu0 }
 0x1fd   : > { %v1827_v47 = vpop.f32.mrb[37].mxu0 }
 0x1fe   : > { %v1828_v32 = vadd.f32 %v1827_v47, %v1826_v27  ;;  %v1829_v7 = vpop.f32.mrb[38].mxu0 }
 0x1ff   : > { %v1830_v46 = vpop.f32.mrb[39].mxu0 }
 0x200   : > { %v1831_v35 = vadd.f32 %v1830_v46, %v1829_v7  ;;  %v1890_v60 = vpop.f32.mrb[36].mxu1  ;;  %v1270_v2 = vadd.f32 %v1828_v32, %v2910_v49 }
 0x201   : > { %v1891_v0 = vpop.f32.mrb[37].mxu1 }
 0x202   : > { %v1892_v4 = vadd.f32 %v1891_v0, %v1890_v60  ;;  %v1893_v59 = vpop.f32.mrb[38].mxu1  ;;  %v1273_v48 = vadd.f32 %v1831_v35, %v2910_v49 }
 0x203   : > { %v1894_v8 = vpop.f32.mrb[39].mxu1 }
 0x204   : > { %v1367_v31 = vadd.f32 %v1892_v4, %v1270_v2  ;;  %v1895_v37 = vadd.f32 %v1894_v8, %v1893_v59 }
 0x206   : > { %1423 = vst.msk [vmem:[%s2914_s18 + $0x10] sm:$0xff] %vm393_vm0, %v1367_v31  ;;  %v1370_v16 = vadd.f32 %v1895_v37, %v1273_v48 }
 0x208   : > { %1424 = vst.msk [vmem:[%s2914_s18 + $0x18] sm:$0xff] %vm393_vm0, %v1370_v16 }
 0x20d   : > { %v1832_v56 = vpop.f32.mrb[40].mxu0 }
 0x20e   : > { %v1833_v25 = vpop.f32.mrb[41].mxu0 }
 0x20f   : > { %v1896_v29 = vpop.f32.mrb[40].mxu1  ;;  %v1834_v18 = vadd.f32 %v1833_v25, %v1832_v56  ;;  %v1835_v13 = vpop.f32.mrb[42].mxu0 }
 0x210   : > { %v1897_v24 = vpop.f32.mrb[41].mxu1  ;;  %v1836_v6 = vpop.f32.mrb[43].mxu0 }
 0x211   : > { %v1278_v43 = vadd.f32 %v1834_v18, %v2910_v49  ;;  %v1898_v50 = vadd.f32 %v1897_v24, %v1896_v29  ;;  %v1899_v19 = vpop.f32.mrb[42].mxu1  ;;  %v1837_v58 = vadd.f32 %v1836_v6, %v1835_v13 }
 0x212   : > { %v1900_v10 = vpop.f32.mrb[43].mxu1 }
 0x213   : > { %v1375_v57 = vadd.f32 %v1898_v50, %v1278_v43  ;;  %v1281_v33 = vadd.f32 %v1837_v58, %v2910_v49  ;;  %v1901_v36 = vadd.f32 %v1900_v10, %v1899_v19 }
 0x215   : > { %1425 = vst.msk [vmem:[%s2914_s18 + $0x20] sm:$0xff] %vm393_vm0, %v1375_v57  ;;  %v1378_v20 = vadd.f32 %v1901_v36, %v1281_v33 }
 0x217   : > { %1426 = vst.msk [vmem:[%s2914_s18 + $0x28] sm:$0xff] %vm393_vm0, %v1378_v20 }
 0x21b   : > { %v1838_v3 = vpop.f32.mrb[44].mxu0 }
 0x21c   : > { %v1902_v45 = vpop.f32.mrb[44].mxu1  ;;  %v1839_v41 = vpop.f32.mrb[45].mxu0 }
 0x21d   : > { %v1840_v63 = vadd.f32 %v1839_v41, %v1838_v3  ;;  %v1903_v11 = vpop.f32.mrb[45].mxu1  ;;  %v1841_v23 = vpop.f32.mrb[46].mxu0 }
 0x21e   : > { %v1904_v61 = vadd.f32 %v1903_v11, %v1902_v45  ;;  %v1905_v54 = vpop.f32.mrb[46].mxu1  ;;  %v1842_v28 = vpop.f32.mrb[47].mxu0 }
 0x21f   : > { %v1286_v1 = vadd.f32 %v1840_v63, %v2910_v49  ;;  %v1843_v39 = vadd.f32 %v1842_v28, %v1841_v23  ;;  %v1906_v52 = vpop.f32.mrb[47].mxu1 }
 0x220   : > { %v1907_v42 = vadd.f32 %v1906_v52, %v1905_v54 }
 0x221   : > { %v1383_v12 = vadd.f32 %v1904_v61, %v1286_v1  ;;  %v1289_v15 = vadd.f32 %v1843_v39, %v2910_v49 }
 0x223   : > { %1427 = vst.msk [vmem:[%s2914_s18 + $0x30] sm:$0xff] %vm393_vm0, %v1383_v12  ;;  %v1386_v14 = vadd.f32 %v1907_v42, %v1289_v15  ;;  %v1844_v51 = vpop.f32.mrb[48].mxu0 }
 0x224   : > { %v1908_v55 = vpop.f32.mrb[48].mxu1  ;;  %v1845_v44 = vpop.f32.mrb[49].mxu0 }
 0x225   : > { %1428 = vst.msk [vmem:[%s2914_s18 + $0x38] sm:$0xff] %vm393_vm0, %v1386_v14  ;;  %v1846_v38 = vadd.f32 %v1845_v44, %v1844_v51  ;;  %v1909_v26 = vpop.f32.mrb[49].mxu1  ;;  %v1847_v34 = vpop.f32.mrb[50].mxu0 }
 0x226   : > { %v1910_v9 = vadd.f32 %v1909_v26, %v1908_v55  ;;  %v1911_v21 = vpop.f32.mrb[50].mxu1  ;;  %v1848_v17 = vpop.f32.mrb[51].mxu0 }
 0x227   : > { %v1294_v40 = vadd.f32 %v1846_v38, %v2910_v49  ;;  %v1849_v30 = vadd.f32 %v1848_v17, %v1847_v34  ;;  %v1912_v22 = vpop.f32.mrb[51].mxu1 }
 0x228   : > { %v1913_v5 = vadd.f32 %v1912_v22, %v1911_v21 }
 0x229   : > { %v1391_v53 = vadd.f32 %v1910_v9, %v1294_v40  ;;  %v1297_v62 = vadd.f32 %v1849_v30, %v2910_v49 }
 0x22b   : > { %1429 = vst.msk [vmem:[%s2914_s18 + $0x40] sm:$0xff] %vm393_vm0, %v1391_v53  ;;  %v1394_v27 = vadd.f32 %v1913_v5, %v1297_v62  ;;  %v1850_v47 = vpop.f32.mrb[52].mxu0 }
 0x22c   : > { %v1914_v32 = vpop.f32.mrb[52].mxu1  ;;  %v1851_v7 = vpop.f32.mrb[53].mxu0 }
 0x22d   : > { %1430 = vst.msk [vmem:[%s2914_s18 + $0x48] sm:$0xff] %vm393_vm0, %v1394_v27  ;;  %v1852_v46 = vadd.f32 %v1851_v7, %v1850_v47  ;;  %v1915_v35 = vpop.f32.mrb[53].mxu1  ;;  %v1853_v60 = vpop.f32.mrb[54].mxu0 }
 0x22e   : > { %v1916_v2 = vadd.f32 %v1915_v35, %v1914_v32  ;;  %v1917_v0 = vpop.f32.mrb[54].mxu1  ;;  %v1854_v4 = vpop.f32.mrb[55].mxu0 }
 0x22f   : > { %v1302_v59 = vadd.f32 %v1852_v46, %v2910_v49  ;;  %v1855_v48 = vadd.f32 %v1854_v4, %v1853_v60  ;;  %v1918_v8 = vpop.f32.mrb[55].mxu1 }
 0x230   : > { %v1919_v31 = vadd.f32 %v1918_v8, %v1917_v0 }
 0x231   : > { %v1399_v37 = vadd.f32 %v1916_v2, %v1302_v59  ;;  %v1305_v16 = vadd.f32 %v1855_v48, %v2910_v49 }
 0x233   : > { %1431 = vst.msk [vmem:[%s2914_s18 + $0x50] sm:$0xff] %vm393_vm0, %v1399_v37  ;;  %v1402_v56 = vadd.f32 %v1919_v31, %v1305_v16  ;;  %v1856_v25 = vpop.f32.mrb[56].mxu0 }
 0x234   : > { %v1920_v29 = vpop.f32.mrb[56].mxu1  ;;  %v1857_v18 = vpop.f32.mrb[57].mxu0 }
 0x235   : > { %1432 = vst.msk [vmem:[%s2914_s18 + $0x58] sm:$0xff] %vm393_vm0, %v1402_v56  ;;  %v1858_v13 = vadd.f32 %v1857_v18, %v1856_v25  ;;  %v1921_v24 = vpop.f32.mrb[57].mxu1  ;;  %v1859_v6 = vpop.f32.mrb[58].mxu0 }
 0x236   : > { %v1922_v43 = vadd.f32 %v1921_v24, %v1920_v29  ;;  %v1923_v50 = vpop.f32.mrb[58].mxu1  ;;  %v1860_v19 = vpop.f32.mrb[59].mxu0 }
 0x237   : > { %v1310_v58 = vadd.f32 %v1858_v13, %v2910_v49  ;;  %v1861_v10 = vadd.f32 %v1860_v19, %v1859_v6  ;;  %v1924_v57 = vpop.f32.mrb[59].mxu1 }
 0x238   : > { %v1925_v33 = vadd.f32 %v1924_v57, %v1923_v50 }
 0x239   : > { %v1407_v36 = vadd.f32 %v1922_v43, %v1310_v58  ;;  %v1313_v20 = vadd.f32 %v1861_v10, %v2910_v49 }
 0x23b   : > { %1433 = vst.msk [vmem:[%s2914_s18 + $0x60] sm:$0xff] %vm393_vm0, %v1407_v36  ;;  %v1410_v3 = vadd.f32 %v1925_v33, %v1313_v20  ;;  %v1862_v45 = vpop.f32.mrb[60].mxu0 }
 0x23c   : > { %v1926_v41 = vpop.f32.mrb[60].mxu1  ;;  %v1863_v63 = vpop.f32.mrb[61].mxu0 }
 0x23d   : > { %1434 = vst.msk [vmem:[%s2914_s18 + $0x68] sm:$0xff] %vm393_vm0, %v1410_v3  ;;  %v1864_v11 = vadd.f32 %v1863_v63, %v1862_v45  ;;  %v1927_v23 = vpop.f32.mrb[61].mxu1  ;;  %v1865_v61 = vpop.f32.mrb[62].mxu0 }
 0x23e   : > { %v1928_v54 = vadd.f32 %v1927_v23, %v1926_v41  ;;  %v1929_v28 = vpop.f32.mrb[62].mxu1  ;;  %v1866_v1 = vpop.f32.mrb[63].mxu0 }
 0x23f   : > { %v1318_v39 = vadd.f32 %v1864_v11, %v2910_v49  ;;  %v1867_v52 = vadd.f32 %v1866_v1, %v1865_v61  ;;  %v1930_v42 = vpop.f32.mrb[63].mxu1  ;;  %1443 = sbr.rel (!%p2285_p4) target bundleno = 631 (0x277), region = 44 }
 0x240   : > { %v1931_v12 = vadd.f32 %v1930_v42, %v1929_v28 }
 0x241   : > { %v1415_v15 = vadd.f32 %v1928_v54, %v1318_v39  ;;  %v1321_v14 = vadd.f32 %v1867_v52, %v2910_v49 }
 0x243   : > { %1435 = vst.msk [vmem:[%s2914_s18 + $0x70] sm:$0xff] %vm393_vm0, %v1415_v15  ;;  %v1418_v51 = vadd.f32 %v1931_v12, %v1321_v14 }
 0x245   : > { %1436 = vst.msk [vmem:[%s2914_s18 + $0x78] sm:$0xff] %vm393_vm0, %v1418_v51 }
 0x246   : > { %s3084_s28 = smov (!%p1446_p8, %s1445_s28), 16 }
 0x247   : > { %s1786_s9 = sshll.u32 %s3084_s28, 7 }
 0x248   : > { %p1789_p9 = scmp.eq.s32.totalorder %s1786_s9, 0 }
 0x249   : > { %s2975_s17 = sshrl.u32 (!%p1789_p9), %s3084_s28, 4 }
 0x24a   : > { %1454 = sbr.rel (%p1789_p9) target bundleno = 631 (0x277), region = 48  ;;  %p1790_p10 = scmp.le.s32.totalorder (!%p1789_p9), %s2975_s17, 0 }
 0x251   : > { %1668 = sbr.rel (%p1790_p10) target bundleno = 610 (0x262), region = 124  ;;  %s3077_s21 = smov (!%p1790_p10), %s2969_s8 }
 0x252   : > { %s3078_s26 = smov (!%p1790_p10), %s2914_s18  ;;  %s2984_s29 = smov (!%p1790_p10), 0  }
 0x253   : > { %s2986_s10 = smov (!%p1790_p10), 0  }
 0x258 LB: >> { %v1546_v49 = vld [vmem:[%s2203_s26] sm:$0xff]  ;;  %v1548_v55 = vld [vmem:[%s2203_s26 + $0x8] sm:$0xff]  ;;  %v1550_v44 = vld [vmem:[%s2203_s26 + $0x10] sm:$0xff]  ;;  %s1578_s11 = sadd.s32 1, %s2207_s29  ;;  %s1540_s10 = sadd.s32 1, %s2211_s10   ;;  %s2211_s10 = sphi %s2986_s10, %s1540_s10   ;;  %s2207_s29 = sphi %s2984_s29, %s3079_s29   ;;  %s2203_s26 = sphi %s3078_s26, %s1583_s26   ;;  %s2199_s21 = sphi %s3077_s21, %s1584_s21  }
 0x259   : >> { %1547 = vst [vmem:[%s2199_s21] sm:$0xff] %v1546_v49  ;;  %1549 = vst [vmem:[%s2199_s21 + $0x8] sm:$0xff] %v1548_v55  ;;  %v1552_v38 = vld [vmem:[%s2203_s26 + $0x18] sm:$0xff]  ;;  %v1554_v26 = vld [vmem:[%s2203_s26 + $0x20] sm:$0xff]  ;;  %p1579_p11 = scmp.ge.s32.totalorder %s1578_s11, %s2975_s17  ;;  %p1539_p12 = scmp.ge.s32.totalorder %s1540_s10, %s2975_s17 }
 0x25a   : >> { %1551 = vst [vmem:[%s2199_s21 + $0x10] sm:$0xff] %v1550_v44  ;;  %v1556_v34 = vld [vmem:[%s2203_s26 + $0x28] sm:$0xff]  ;;  %1553 = vst [vmem:[%s2199_s21 + $0x18] sm:$0xff] %v1552_v38  ;;  %v1558_v9 = vld [vmem:[%s2203_s26 + $0x30] sm:$0xff] }
 0x25b   : >> { %1555 = vst [vmem:[%s2199_s21 + $0x20] sm:$0xff] %v1554_v26  ;;  %1557 = vst [vmem:[%s2199_s21 + $0x28] sm:$0xff] %v1556_v34  ;;  %v1560_v21 = vld [vmem:[%s2203_s26 + $0x38] sm:$0xff]  ;;  %v1562_v17 = vld [vmem:[%s2203_s26 + $0x40] sm:$0xff]  ;;  %s3086_s11 = smov (%p1579_p11, %s1578_s11), 0  ;;  %1542 = sbr.rel (!%p1539_p12) target bundleno = 600 (0x258), region = 130 }
 0x25c   : >> { %1559 = vst [vmem:[%s2199_s21 + $0x30] sm:$0xff] %v1558_v9  ;;  %1561 = vst [vmem:[%s2199_s21 + $0x38] sm:$0xff] %v1560_v21  ;;  %v1564_v40 = vld [vmem:[%s2203_s26 + $0x48] sm:$0xff]  ;;  %v1566_v30 = vld [vmem:[%s2203_s26 + $0x50] sm:$0xff]  ;;  %s1791_s12 = sshll.u32 %s3086_s11, 7  ;;  %s3079_s29 = smov %s3086_s11 }
 0x25d   : >> { %1563 = vst [vmem:[%s2199_s21 + $0x40] sm:$0xff] %v1562_v17  ;;  %v1568_v22 = vld [vmem:[%s2203_s26 + $0x58] sm:$0xff]  ;;  %1565 = vst [vmem:[%s2199_s21 + $0x48] sm:$0xff] %v1564_v40  ;;  %v1570_v5 = vld [vmem:[%s2203_s26 + $0x60] sm:$0xff] }
 0x25e   : >> { %1567 = vst [vmem:[%s2199_s21 + $0x50] sm:$0xff] %v1566_v30  ;;  %1569 = vst [vmem:[%s2199_s21 + $0x58] sm:$0xff] %v1568_v22  ;;  %v1572_v53 = vld [vmem:[%s2203_s26 + $0x68] sm:$0xff]  ;;  %v1574_v62 = vld [vmem:[%s2203_s26 + $0x70] sm:$0xff] }
 0x25f   : >> { %1571 = vst [vmem:[%s2199_s21 + $0x60] sm:$0xff] %v1570_v5  ;;  %1573 = vst [vmem:[%s2199_s21 + $0x68] sm:$0xff] %v1572_v53  ;;  %v1576_v27 = vld [vmem:[%s2203_s26 + $0x78] sm:$0xff]  ;;  %s1583_s26 = scalar_lea.vmem %s2914_s18, %s1791_s12 [#allocation2]  }
 0x260   : >> { %1575 = vst [vmem:[%s2199_s21 + $0x70] sm:$0xff] %v1574_v62  ;;  %1577 = vst [vmem:[%s2199_s21 + $0x78] sm:$0xff] %v1576_v27  ;;  %s1584_s21 = scalar_lea.vmem %s2969_s8, %s1791_s12  }
 0x262 PF: > { %s3044_s13 = sand.u32 15, %s3084_s28   ;;  %s1802_s14 = sshll.u32 %s2975_s17, 7 }
 0x263   : > { %s1589_s15 = scalar_lea.vmem %s2914_s18, %s1802_s14 [#allocation2]   ;;  %s1591_s16 = scalar_lea.vmem %s2969_s8, %s1802_s14  }
 0x264   : > { %p1796_p13 = scmp.le.s32.totalorder %s3044_s13, 0 }
 0x265   : > { %s2213_s20 = smov (!%p1796_p13), %s1591_s16   ;;  %s2217_s23 = smov (!%p1796_p13), %s1589_s15  }
 0x266   : > { %1682 = sbr.rel (%p1796_p13) target bundleno = 631 (0x277), region = 135  ;;  %s2221_s24 = smov (!%p1796_p13), 0  }
 0x267   : > { %s2225_s27 = smov (!%p1796_p13), 0  }
 0x26d LB: >> { %v1601_v47 = vld [vmem:[%s2219_s23] sm:$0xff]  ;;  %s1603_s28 = sadd.s32 1, %s2223_s24  ;;  %s1595_s27 = sadd.s32 1, %s2227_s27   ;;  %s2227_s27 = sphi %s2225_s27, %s1595_s27   ;;  %s2223_s24 = sphi %s2221_s24, %s2222_s24   ;;  %s2219_s23 = sphi %s2217_s23, %s1608_s23   ;;  %s2215_s20 = sphi %s2213_s20, %s1609_s20  }
 0x26e   : >> { %1602 = vst [vmem:[%s2215_s20] sm:$0xff] %v1601_v47  ;;  %p1604_p0 = scmp.ge.s32.totalorder %s1603_s28, %s3044_s13  ;;  %p1594_p1 = scmp.ge.s32.totalorder %s1595_s27, %s3044_s13 }
 0x270   : >> { %s3088_s28 = smov (%p1604_p0, %s1603_s28), 0  ;;  %1597 = sbr.rel (!%p1594_p1) target bundleno = 621 (0x26d), region = 141 }
 0x271   : >> { %s1797_s18 = sshll.u32 %s3088_s28, 3  ;;  %s2222_s24 = smov %s3088_s28  }
 0x272   : >> { %s1608_s23 = scalar_lea.vmem %s1589_s15, %s1797_s18 [#allocation2]   ;;  %s1609_s20 = scalar_lea.vmem %s1591_s16, %s1797_s18  }
 0x277 PF: > { %p12_p2 = scmp.ge.s32.totalorder %s2275_s22, 6   ;;  %s3080_s18 = smov %s2191_s19 }
 0x278   : > { %s3081_s19 = smov %s2283_s25  ;;  %s3082_s20 = smov %s2275_s22 }
 0x279   :  { %14 = sbr.rel (!%p12_p2) target bundleno = 2 (0x2), region = 152 }

</bundles_post_ra>
